<compile_context>
chip_gen: v6e
topology: v6e:2x2x1
jax: 0.10.0
libtpu: 0.0.40
codegen_flags: <defaults>
</compile_context>

<pallas_src>
import functools
import math

import numpy as np
import jax
import jax.numpy as jnp
from jax.experimental import pallas as pl
from jax.experimental.pallas import tpu as pltpu


# ----------------------------------------------------------------------------
# Kernel
# ----------------------------------------------------------------------------
def _gelu_exact(v):
    # nn.GELU() default (approximate='none'): exact erf-based GELU.
    return 0.5 * v * (1.0 + jax.lax.erf(v * np.float32(1.0 / math.sqrt(2.0))))


def _rblockn_kernel(*refs, nb, S, S_out, shifts, use_size_conv, apply_resample):
    if apply_resample:
        (x_ref, mask_ref, w1_ref, b1_ref, w2_ref, b2_ref, ws_ref, rt_ref,
         o_ref, x9_ref, h9_ref) = refs
    else:
        (x_ref, mask_ref, w1_ref, b1_ref, w2_ref, b2_ref, ws_ref,
         o_ref, x9_ref, h9_ref) = refs
        rt_ref = None

    cin_p = x_ref.shape[1]
    cmid_p = b1_ref.shape[0]

    x = x_ref[0].astype(jnp.float32)          # (Cin_p, L), L = nb*S lane-dense
    mask = mask_ref[...]                      # (9, 1, L)  hoisted constant load

    # --- conv1: 3x3, stride 1, pad 1, no bias (+ folded BN1 scale) -----------
    # Stack 9 shifted+edge-masked copies on the sublane axis -> one matmul.
    for k, sh in enumerate(shifts):
        xs = x if sh == 0 else jnp.roll(x, sh, axis=1)       # static lane rotation
        x9_ref[pl.ds(k * cin_p, cin_p), :] = xs * mask[k]    # aligned slab store
    h = jnp.dot(w1_ref[...], x9_ref[...], preferred_element_type=jnp.float32)
    h = _gelu_exact(h + b1_ref[...])          # BN1 bias + GELU

    # --- conv2: 3x3, stride 1, pad 1, no bias (+ folded BN2 scale) -----------
    for k, sh in enumerate(shifts):
        hs = h if sh == 0 else jnp.roll(h, sh, axis=1)
        h9_ref[pl.ds(k * cmid_p, cmid_p), :] = hs * mask[k]
    y = jnp.dot(w2_ref[...], h9_ref[...], preferred_element_type=jnp.float32)
    y = y + b2_ref[...]                       # BN2 bias

    # --- residual path: 1x1 size_conv when in_width != out_width -------------
    if use_size_conv:
        res = jnp.dot(ws_ref[...], x, preferred_element_type=jnp.float32)
    else:
        res = x
    out = _gelu_exact(res + y)                # (Cout_p, L)

    # --- AvgPool2d / bilinear Upsample as one linear spatial operator --------
    if apply_resample:
        pieces = [jnp.dot(out[:, b * S:(b + 1) * S], rt_ref[...],
                          preferred_element_type=jnp.float32)
                  for b in range(nb)]
        out = pieces[0] if nb == 1 else jnp.concatenate(pieces, axis=1)

    o_ref[0] = out.astype(o_ref.dtype)        # single lane-dense store


# ----------------------------------------------------------------------------
# Glue: precomputed constants (numpy, host side)
# ----------------------------------------------------------------------------
def _round_up(n, m):
    return ((n + m - 1) // m) * m


def _pick_batch_block(N, S, S_out, cin_p, cmid_p, cout_p, budget=20 * (1 << 20)):
    """Largest divisor of N whose per-step VMEM footprint stays under budget."""
    best = 1
    for nb in range(1, N + 1):
        if N % nb:
            continue
        L, Lo = nb * S, nb * S_out
        vmem = 4 * (2 * cin_p * L + 2 * 9 * L + 2 * cout_p * Lo     # pipelined blocks
                    + 9 * cin_p * L + 9 * cmid_p * L                # scratch slabs
                    + (cin_p + cmid_p + 2 * cout_p) * L             # live intermediates
                    + S * S_out)                                    # resample operator
        if vmem <= budget:
            best = nb
    return best


def _tap_shifts_and_masks(H, W, nb):
    """Static lane-roll amounts + edge-validity masks for the 9 conv taps,
    on the batch-packed lane axis of length nb*H*W."""
    S = H * W
    L = nb * S
    rows = np.arange(S) // W
    cols = np.arange(S) % W
    shifts = []
    masks = np.zeros((9, 1, S), np.float32)
    k = 0
    for a in range(3):
        for b in range(3):
            dy, dx = a - 1, b - 1
            d = dy * W + dx                               # flattened displacement
            shifts.append(int((-d) % L))                  # jnp.roll(x, s)[i] = x[i + d]
            valid = ((rows + dy >= 0) & (rows + dy < H) &
                     (cols + dx >= 0) & (cols + dx < W))
            masks[k, 0, :] = valid.astype(np.float32)
            k += 1
    masks = np.tile(masks, (1, 1, nb))                    # (9, 1, nb*S)
    return tuple(shifts), masks


def _pack_conv_weights(w, c_in_p, c_out_p, scale):
    """(Cout, Cin, 3, 3) torch weights -> (Cout_p, 9*Cin_p), BN scale folded in."""
    c_out, c_in = w.shape[0], w.shape[1]
    wt = jnp.transpose(w, (0, 2, 3, 1)) * scale[:, None, None, None]  # (Cout,3,3,Cin)
    wt = jnp.pad(wt, ((0, c_out_p - c_out), (0, 0), (0, 0), (0, c_in_p - c_in)))
    return wt.reshape(c_out_p, 9 * c_in_p).astype(jnp.float32)


def _avgpool1d(n, r):
    m = np.zeros((n // r, n), np.float32)
    for o in range(n // r):
        m[o, o * r:(o + 1) * r] = 1.0 / r
    return m


def _bilinear1d(n, scale):
    # matches torch.nn.Upsample(mode='bilinear', align_corners=False)
    n_out = int(n * scale)
    m = np.zeros((n_out, n), np.float32)
    for o in range(n_out):
        src = (o + 0.5) / scale - 0.5
        src = min(max(src, 0.0), n - 1.0)
        i0 = int(np.floor(src))
        i1 = min(i0 + 1, n - 1)
        f = src - i0
        m[o, i0] += 1.0 - f
        m[o, i1] += f
    return m


def _resample_matrix(H, W, down_rate, up_rate):
    """Operator on the h-major flattened spatial axis: AvgPool then Upsample."""
    R = np.eye(H * W, dtype=np.float32)
    h, w = H, W
    if down_rate is not None:
        R = np.kron(_avgpool1d(h, down_rate), _avgpool1d(w, down_rate)) @ R
        h, w = h // down_rate, w // down_rate
    if up_rate is not None:
        R = np.kron(_bilinear1d(h, up_rate), _bilinear1d(w, up_rate)) @ R
        h, w = int(h * up_rate), int(w * up_rate)
    return R, h, w


# ----------------------------------------------------------------------------
# Wrapper
# ----------------------------------------------------------------------------
def rblockn_forward(x_nchw, params, *, in_width, middle_width, out_width,
                    down_rate=None, up_rate=None):
    N, C, H, W = x_nchw.shape
    assert C == in_width
    if down_rate is not None:
        assert H % down_rate == 0 and W % down_rate == 0
    S = H * W

    cin_p = _round_up(in_width, 8)
    cmid_p = _round_up(middle_width, 8)
    cout_p = _round_up(out_width, 8)

    # BatchNorm2d (inference): fold running stats; scale goes into the weights.
    eps = 1e-5
    s1 = params["bn1_gamma"] / jnp.sqrt(params["bn1_var"] + eps)
    b1 = params["bn1_beta"] - params["bn1_mean"] * s1
    s2 = params["bn2_gamma"] / jnp.sqrt(params["bn2_var"] + eps)
    b2 = params["bn2_beta"] - params["bn2_mean"] * s2

    w1p = _pack_conv_weights(params["conv1_w"], cin_p, cmid_p, s1)   # (Cmid_p, 9*Cin_p)
    w2p = _pack_conv_weights(params["conv2_w"], cmid_p, cout_p, s2)  # (Cout_p, 9*Cmid_p)
    b1p = jnp.pad(b1, (0, cmid_p - middle_width)).reshape(cmid_p, 1).astype(jnp.float32)
    b2p = jnp.pad(b2, (0, cout_p - out_width)).reshape(cout_p, 1).astype(jnp.float32)

    ws = params["size_w"][:, :, 0, 0]                                # (Cout, Cin)
    wsp = jnp.pad(ws, ((0, cout_p - out_width), (0, cin_p - in_width))).astype(jnp.float32)

    use_size_conv = in_width != out_width
    apply_resample = (down_rate is not None) or (up_rate is not None)

    if apply_resample:
        R_np, Ho, Wo = _resample_matrix(H, W, down_rate, up_rate)
        S_out = Ho * Wo
        rT = jnp.asarray(R_np.T)                                     # (S, S_out)
    else:
        Ho, Wo, S_out = H, W, S
        rT = None

    nb = _pick_batch_block(N, S, S_out, cin_p, cmid_p, cout_p)   # imgs per grid step
    G = N // nb
    L = nb * S
    L_out = nb * S_out

    shifts, masks_np = _tap_shifts_and_masks(H, W, nb)
    masks = jnp.asarray(masks_np)                                    # (9, 1, L)

    # NCHW -> (G, Cin_p, nb*S): channels on sublanes, batch-packed spatial on lanes.
    x_flat = x_nchw.reshape(N, in_width, S).astype(jnp.float32)
    if cin_p != in_width:
        x_flat = jnp.pad(x_flat, ((0, 0), (0, cin_p - in_width), (0, 0)))
    x_packed = (x_flat.reshape(G, nb, cin_p, S)
                      .transpose(0, 2, 1, 3)
                      .reshape(G, cin_p, L))

    kernel = functools.partial(
        _rblockn_kernel, nb=nb, S=S, S_out=S_out, shifts=shifts,
        use_size_conv=use_size_conv, apply_resample=apply_resample)

    in_specs = [
        pl.BlockSpec((1, cin_p, L), lambda i: (i, 0, 0)),            # x (batch group)
        pl.BlockSpec((9, 1, L), lambda i: (0, 0, 0)),                # tap edge masks
        pl.BlockSpec((cmid_p, 9 * cin_p), lambda i: (0, 0)),         # packed conv1 (BN1 folded)
        pl.BlockSpec((cmid_p, 1), lambda i: (0, 0)),                 # bn1 bias
        pl.BlockSpec((cout_p, 9 * cmid_p), lambda i: (0, 0)),        # packed conv2 (BN2 folded)
        pl.BlockSpec((cout_p, 1), lambda i: (0, 0)),                 # bn2 bias
        pl.BlockSpec((cout_p, cin_p), lambda i: (0, 0)),             # size_conv weight
    ]
    args = [x_packed, masks, w1p, b1p, w2p, b2p, wsp]
    if apply_resample:
        in_specs.append(pl.BlockSpec((S, S_out), lambda i: (0, 0)))  # resample op (transposed)
        args.append(rT)

    out_packed = pl.pallas_call(
        kernel,
        out_shape=jax.ShapeDtypeStruct((G, cout_p, L_out), x_nchw.dtype),
        grid=(G,),
        in_specs=in_specs,
        out_specs=pl.BlockSpec((1, cout_p, L_out), lambda i: (i, 0, 0)),
        scratch_shapes=[pltpu.VMEM((9 * cin_p, L), jnp.float32),     # stacked shifted x
                        pltpu.VMEM((9 * cmid_p, L), jnp.float32)],   # stacked shifted h
        compiler_params=pltpu.CompilerParams(dimension_semantics=("parallel",)),
    )(*args)

    # (G, Cout_p, nb*S_out) -> NCHW (drop channel padding).
    out = (out_packed.reshape(G, cout_p, nb, S_out)
                     .transpose(0, 2, 1, 3)
                     .reshape(N, cout_p, S_out))
    return out[:, :out_width, :].reshape(N, out_width, Ho, Wo)


# ----------------------------------------------------------------------------
# Pure-JAX reference (for correctness check)
# ----------------------------------------------------------------------------
def _reference_forward(x, params, *, in_width, middle_width, out_width,
                       down_rate=None, up_rate=None):
    eps = 1e-5
    dn = ("NCHW", "OIHW", "NCHW")
    hi = jax.lax.Precision.HIGHEST

    def conv(v, w, pad):
        return jax.lax.conv_general_dilated(
            v, w, (1, 1), ((pad, pad), (pad, pad)), dimension_numbers=dn, precision=hi)

    def bn(v, g, b, m, var):
        s = g / jnp.sqrt(var + eps)
        return v * s[None, :, None, None] + (b - m * s)[None, :, None, None]

    h = bn(conv(x, params["conv1_w"], 1), params["bn1_gamma"], params["bn1_beta"],
           params["bn1_mean"], params["bn1_var"])
    h = jax.nn.gelu(h, approximate=False)
    y = bn(conv(h, params["conv2_w"], 1), params["bn2_gamma"], params["bn2_beta"],
           params["bn2_mean"], params["bn2_var"])
    xr = conv(x, params["size_w"], 0) if in_width != out_width else x
    out = jax.nn.gelu(xr + y, approximate=False)
    if down_rate is not None:
        n_, c_, h_, w_ = out.shape
        out = out.reshape(n_, c_, h_ // down_rate, down_rate,
                          w_ // down_rate, down_rate).mean(axis=(3, 5))
    if up_rate is not None:
        n_, c_, h_, w_ = out.shape
        uh = jnp.asarray(_bilinear1d(h_, up_rate))
        uw = jnp.asarray(_bilinear1d(w_, up_rate))
        out = jnp.einsum("uh,nchw,vw->ncuv", uh, out, uw, precision=hi)
    return out


# ----------------------------------------------------------------------------
# Deterministic parameter init (shapes from RBlockN.__init__)
# ----------------------------------------------------------------------------
def init_params(key, in_width, middle_width, out_width):
    ks = jax.random.split(key, 5)
    return {
        "conv1_w": 0.1 * jax.random.normal(ks[0], (middle_width, in_width, 3, 3), jnp.float32),
        "conv2_w": 0.1 * jax.random.normal(ks[1], (out_width, middle_width, 3, 3), jnp.float32),
        "size_w":  0.1 * jax.random.normal(ks[2], (out_width, in_width, 1, 1), jnp.float32),
        "bn1_gamma": 1.0 + 0.1 * jax.random.normal(ks[3], (middle_width,), jnp.float32),
        "bn1_beta":  0.05 * jnp.ones((middle_width,), jnp.float32),
        "bn1_mean":  0.02 * jnp.ones((middle_width,), jnp.float32),
        "bn1_var":   0.90 * jnp.ones((middle_width,), jnp.float32),
        "bn2_gamma": 1.0 + 0.1 * jax.random.normal(ks[4], (out_width,), jnp.float32),
        "bn2_beta": -0.05 * jnp.ones((out_width,), jnp.float32),
        "bn2_mean":  0.01 * jnp.ones((out_width,), jnp.float32),
        "bn2_var":   1.10 * jnp.ones((out_width,), jnp.float32),
    }


if __name__ == "__main__":
    in_w, mid_w, out_w = 4, 8, 8          # in_width != out_width -> size_conv path
    N, H, W = 2, 16, 16
    down_rate, up_rate = 2, None          # exercise the AvgPool2d branch

    key = jax.random.PRNGKey(0)
    kx, kp = jax.random.split(key)
    x = jax.random.normal(kx, (N, in_w, H, W), jnp.float32)   # NCHW, like PyTorch
    params = init_params(kp, in_w, mid_w, out_w)

    out = rblockn_forward(x, params, in_width=in_w, middle_width=mid_w,
                          out_width=out_w, down_rate=down_rate, up_rate=up_rate)
    out = jax.block_until_ready(out)

    expected = (N, out_w, H // down_rate, W // down_rate)
    assert out.shape == expected, (out.shape, expected)
    assert bool(jnp.all(jnp.isfinite(out)))

    ref = _reference_forward(x, params, in_width=in_w, middle_width=mid_w,
                             out_width=out_w, down_rate=down_rate, up_rate=up_rate)
    max_err = float(jnp.max(jnp.abs(out - ref)))
    assert max_err < 2e-3, f"max abs error vs reference: {max_err}"
    print("KERNEL_OK")
</pallas_src>

<mosaic_0001>
module attributes {stable_mosaic.version = 11 : i64} {
  func.func @_rblockn_kernel(%arg0: i32, %arg1: memref<1x8x512xf32, #tpu.memory_space<vmem>>, %arg2: memref<9x1x512xf32, #tpu.memory_space<vmem>>, %arg3: memref<8x72xf32, #tpu.memory_space<vmem>>, %arg4: memref<8x1xf32, #tpu.memory_space<vmem>>, %arg5: memref<8x72xf32, #tpu.memory_space<vmem>>, %arg6: memref<8x1xf32, #tpu.memory_space<vmem>>, %arg7: memref<8x8xf32, #tpu.memory_space<vmem>>, %arg8: memref<256x64xf32, #tpu.memory_space<vmem>>, %arg9: memref<1x8x128xf32, #tpu.memory_space<vmem>>, %arg10: memref<72x512xf32, #tpu.memory_space<vmem>>, %arg11: memref<72x512xf32, #tpu.memory_space<vmem>>) attributes {dimension_semantics = [#tpu.dimension_semantics<parallel>], iteration_bounds = array<i64: 1>, scalar_prefetch = 0 : i64, scratch_operands = 2 : i64, tpu.core_type = #tpu.core_type<tc>, window_params = [{transform_indices = @transform_0, window_bounds = array<i64: 1, 8, 512>}, {pipeline_mode = #tpu.pipeline_mode<synchronous>, transform_indices = @transform_1, window_bounds = array<i64: 9, 1, 512>}, {pipeline_mode = #tpu.pipeline_mode<synchronous>, transform_indices = @transform_2, window_bounds = array<i64: 8, 72>}, {pipeline_mode = #tpu.pipeline_mode<synchronous>, transform_indices = @transform_3, window_bounds = array<i64: 8, 1>}, {pipeline_mode = #tpu.pipeline_mode<synchronous>, transform_indices = @transform_4, window_bounds = array<i64: 8, 72>}, {pipeline_mode = #tpu.pipeline_mode<synchronous>, transform_indices = @transform_5, window_bounds = array<i64: 8, 1>}, {pipeline_mode = #tpu.pipeline_mode<synchronous>, transform_indices = @transform_6, window_bounds = array<i64: 8, 8>}, {pipeline_mode = #tpu.pipeline_mode<synchronous>, transform_indices = @transform_7, window_bounds = array<i64: 256, 64>}, {transform_indices = @transform_8, window_bounds = array<i64: 1, 8, 128>}]} {
    %c0 = arith.constant 0 : index
    %c0_0 = arith.constant 0 : index
    %c0_1 = arith.constant 0 : index
    %0 = vector.load %arg1[%c0, %c0_0, %c0_1] : memref<1x8x512xf32, #tpu.memory_space<vmem>>, vector<1x8x512xf32>
    %1 = vector.shape_cast %0 : vector<1x8x512xf32> to vector<8x512xf32>
    %c0_2 = arith.constant 0 : index
    %c0_3 = arith.constant 0 : index
    %c0_4 = arith.constant 0 : index
    %2 = vector.load %arg2[%c0_2, %c0_3, %c0_4] : memref<9x1x512xf32, #tpu.memory_space<vmem>>, vector<9x1x512xf32>
    %3 = vector.extract_strided_slice %1 {offsets = [0, 495], sizes = [8, 17], strides = [1, 1]} : vector<8x512xf32> to vector<8x17xf32>
    %4 = vector.extract_strided_slice %1 {offsets = [0, 0], sizes = [8, 495], strides = [1, 1]} : vector<8x512xf32> to vector<8x495xf32>
    %5 = tpu.concatenate %3, %4 in 1 : vector<8x17xf32>, vector<8x495xf32> -> vector<8x512xf32>
    %6 = vector.extract_strided_slice %2 {offsets = [0, 0, 0], sizes = [1, 1, 512], strides = [1, 1, 1]} : vector<9x1x512xf32> to vector<1x1x512xf32>
    %7 = vector.shape_cast %6 : vector<1x1x512xf32> to vector<1x512xf32>
    %8 = vector.broadcast %7 : vector<1x512xf32> to vector<8x512xf32>
    %9 = arith.mulf %5, %8 : vector<8x512xf32>
    %c0_5 = arith.constant 0 : index
    %c0_6 = arith.constant 0 : index
    %10 = vector.load %arg10[%c0_5, %c0_6] : memref<72x512xf32, #tpu.memory_space<vmem>>, vector<8x512xf32>
    tpu.vector_store %arg10[%c0_5, %c0_6], %9 {strides = array<i32>} : memref<72x512xf32, #tpu.memory_space<vmem>>, vector<8x512xf32>,
    %11 = vector.extract_strided_slice %1 {offsets = [0, 496], sizes = [8, 16], strides = [1, 1]} : vector<8x512xf32> to vector<8x16xf32>
    %12 = vector.extract_strided_slice %1 {offsets = [0, 0], sizes = [8, 496], strides = [1, 1]} : vector<8x512xf32> to vector<8x496xf32>
    %13 = tpu.concatenate %11, %12 in 1 : vector<8x16xf32>, vector<8x496xf32> -> vector<8x512xf32>
    %14 = vector.extract_strided_slice %2 {offsets = [1, 0, 0], sizes = [1, 1, 512], strides = [1, 1, 1]} : vector<9x1x512xf32> to vector<1x1x512xf32>
    %15 = vector.shape_cast %14 : vector<1x1x512xf32> to vector<1x512xf32>
    %16 = vector.broadcast %15 : vector<1x512xf32> to vector<8x512xf32>
    %17 = arith.mulf %13, %16 : vector<8x512xf32>
    %c8 = arith.constant 8 : index
    %c0_7 = arith.constant 0 : index
    %18 = vector.load %arg10[%c8, %c0_7] : memref<72x512xf32, #tpu.memory_space<vmem>>, vector<8x512xf32>
    tpu.vector_store %arg10[%c8, %c0_7], %17 {strides = array<i32>} : memref<72x512xf32, #tpu.memory_space<vmem>>, vector<8x512xf32>,
    %19 = vector.extract_strided_slice %1 {offsets = [0, 497], sizes = [8, 15], strides = [1, 1]} : vector<8x512xf32> to vector<8x15xf32>
    %20 = vector.extract_strided_slice %1 {offsets = [0, 0], sizes = [8, 497], strides = [1, 1]} : vector<8x512xf32> to vector<8x497xf32>
    %21 = tpu.concatenate %19, %20 in 1 : vector<8x15xf32>, vector<8x497xf32> -> vector<8x512xf32>
    %22 = vector.extract_strided_slice %2 {offsets = [2, 0, 0], sizes = [1, 1, 512], strides = [1, 1, 1]} : vector<9x1x512xf32> to vector<1x1x512xf32>
    %23 = vector.shape_cast %22 : vector<1x1x512xf32> to vector<1x512xf32>
    %24 = vector.broadcast %23 : vector<1x512xf32> to vector<8x512xf32>
    %25 = arith.mulf %21, %24 : vector<8x512xf32>
    %c16 = arith.constant 16 : index
    %c0_8 = arith.constant 0 : index
    %26 = vector.load %arg10[%c16, %c0_8] : memref<72x512xf32, #tpu.memory_space<vmem>>, vector<8x512xf32>
    tpu.vector_store %arg10[%c16, %c0_8], %25 {strides = array<i32>} : memref<72x512xf32, #tpu.memory_space<vmem>>, vector<8x512xf32>,
    %27 = vector.extract_strided_slice %1 {offsets = [0, 511], sizes = [8, 1], strides = [1, 1]} : vector<8x512xf32> to vector<8x1xf32>
    %28 = vector.extract_strided_slice %1 {offsets = [0, 0], sizes = [8, 511], strides = [1, 1]} : vector<8x512xf32> to vector<8x511xf32>
    %29 = tpu.concatenate %27, %28 in 1 : vector<8x1xf32>, vector<8x511xf32> -> vector<8x512xf32>
    %30 = vector.extract_strided_slice %2 {offsets = [3, 0, 0], sizes = [1, 1, 512], strides = [1, 1, 1]} : vector<9x1x512xf32> to vector<1x1x512xf32>
    %31 = vector.shape_cast %30 : vector<1x1x512xf32> to vector<1x512xf32>
    %32 = vector.broadcast %31 : vector<1x512xf32> to vector<8x512xf32>
    %33 = arith.mulf %29, %32 : vector<8x512xf32>
    %c24 = arith.constant 24 : index
    %c0_9 = arith.constant 0 : index
    %34 = vector.load %arg10[%c24, %c0_9] : memref<72x512xf32, #tpu.memory_space<vmem>>, vector<8x512xf32>
    tpu.vector_store %arg10[%c24, %c0_9], %33 {strides = array<i32>} : memref<72x512xf32, #tpu.memory_space<vmem>>, vector<8x512xf32>,
    %35 = vector.extract_strided_slice %2 {offsets = [4, 0, 0], sizes = [1, 1, 512], strides = [1, 1, 1]} : vector<9x1x512xf32> to vector<1x1x512xf32>
    %36 = vector.shape_cast %35 : vector<1x1x512xf32> to vector<1x512xf32>
    %37 = vector.broadcast %36 : vector<1x512xf32> to vector<8x512xf32>
    %38 = arith.mulf %1, %37 : vector<8x512xf32>
    %c32 = arith.constant 32 : index
    %c0_10 = arith.constant 0 : index
    %39 = vector.load %arg10[%c32, %c0_10] : memref<72x512xf32, #tpu.memory_space<vmem>>, vector<8x512xf32>
    tpu.vector_store %arg10[%c32, %c0_10], %38 {strides = array<i32>} : memref<72x512xf32, #tpu.memory_space<vmem>>, vector<8x512xf32>,
    %40 = vector.extract_strided_slice %1 {offsets = [0, 1], sizes = [8, 511], strides = [1, 1]} : vector<8x512xf32> to vector<8x511xf32>
    %41 = vector.extract_strided_slice %1 {offsets = [0, 0], sizes = [8, 1], strides = [1, 1]} : vector<8x512xf32> to vector<8x1xf32>
    %42 = tpu.concatenate %40, %41 in 1 : vector<8x511xf32>, vector<8x1xf32> -> vector<8x512xf32>
    %43 = vector.extract_strided_slice %2 {offsets = [5, 0, 0], sizes = [1, 1, 512], strides = [1, 1, 1]} : vector<9x1x512xf32> to vector<1x1x512xf32>
    %44 = vector.shape_cast %43 : vector<1x1x512xf32> to vector<1x512xf32>
    %45 = vector.broadcast %44 : vector<1x512xf32> to vector<8x512xf32>
    %46 = arith.mulf %42, %45 : vector<8x512xf32>
    %c40 = arith.constant 40 : index
    %c0_11 = arith.constant 0 : index
    %47 = vector.load %arg10[%c40, %c0_11] : memref<72x512xf32, #tpu.memory_space<vmem>>, vector<8x512xf32>
    tpu.vector_store %arg10[%c40, %c0_11], %46 {strides = array<i32>} : memref<72x512xf32, #tpu.memory_space<vmem>>, vector<8x512xf32>,
    %48 = vector.extract_strided_slice %1 {offsets = [0, 15], sizes = [8, 497], strides = [1, 1]} : vector<8x512xf32> to vector<8x497xf32>
    %49 = vector.extract_strided_slice %1 {offsets = [0, 0], sizes = [8, 15], strides = [1, 1]} : vector<8x512xf32> to vector<8x15xf32>
    %50 = tpu.concatenate %48, %49 in 1 : vector<8x497xf32>, vector<8x15xf32> -> vector<8x512xf32>
    %51 = vector.extract_strided_slice %2 {offsets = [6, 0, 0], sizes = [1, 1, 512], strides = [1, 1, 1]} : vector<9x1x512xf32> to vector<1x1x512xf32>
    %52 = vector.shape_cast %51 : vector<1x1x512xf32> to vector<1x512xf32>
    %53 = vector.broadcast %52 : vector<1x512xf32> to vector<8x512xf32>
    %54 = arith.mulf %50, %53 : vector<8x512xf32>
    %c48 = arith.constant 48 : index
    %c0_12 = arith.constant 0 : index
    %55 = vector.load %arg10[%c48, %c0_12] : memref<72x512xf32, #tpu.memory_space<vmem>>, vector<8x512xf32>
    tpu.vector_store %arg10[%c48, %c0_12], %54 {strides = array<i32>} : memref<72x512xf32, #tpu.memory_space<vmem>>, vector<8x512xf32>,
    %56 = vector.extract_strided_slice %1 {offsets = [0, 16], sizes = [8, 496], strides = [1, 1]} : vector<8x512xf32> to vector<8x496xf32>
    %57 = vector.extract_strided_slice %1 {offsets = [0, 0], sizes = [8, 16], strides = [1, 1]} : vector<8x512xf32> to vector<8x16xf32>
    %58 = tpu.concatenate %56, %57 in 1 : vector<8x496xf32>, vector<8x16xf32> -> vector<8x512xf32>
    %59 = vector.extract_strided_slice %2 {offsets = [7, 0, 0], sizes = [1, 1, 512], strides = [1, 1, 1]} : vector<9x1x512xf32> to vector<1x1x512xf32>
    %60 = vector.shape_cast %59 : vector<1x1x512xf32> to vector<1x512xf32>
    %61 = vector.broadcast %60 : vector<1x512xf32> to vector<8x512xf32>
    %62 = arith.mulf %58, %61 : vector<8x512xf32>
    %c56 = arith.constant 56 : index
    %c0_13 = arith.constant 0 : index
    %63 = vector.load %arg10[%c56, %c0_13] : memref<72x512xf32, #tpu.memory_space<vmem>>, vector<8x512xf32>
    tpu.vector_store %arg10[%c56, %c0_13], %62 {strides = array<i32>} : memref<72x512xf32, #tpu.memory_space<vmem>>, vector<8x512xf32>,
    %64 = vector.extract_strided_slice %1 {offsets = [0, 17], sizes = [8, 495], strides = [1, 1]} : vector<8x512xf32> to vector<8x495xf32>
    %65 = vector.extract_strided_slice %1 {offsets = [0, 0], sizes = [8, 17], strides = [1, 1]} : vector<8x512xf32> to vector<8x17xf32>
    %66 = tpu.concatenate %64, %65 in 1 : vector<8x495xf32>, vector<8x17xf32> -> vector<8x512xf32>
    %67 = vector.extract_strided_slice %2 {offsets = [8, 0, 0], sizes = [1, 1, 512], strides = [1, 1, 1]} : vector<9x1x512xf32> to vector<1x1x512xf32>
    %68 = vector.shape_cast %67 : vector<1x1x512xf32> to vector<1x512xf32>
    %69 = vector.broadcast %68 : vector<1x512xf32> to vector<8x512xf32>
    %70 = arith.mulf %66, %69 : vector<8x512xf32>
    %c64 = arith.constant 64 : index
    %c0_14 = arith.constant 0 : index
    %71 = vector.load %arg10[%c64, %c0_14] : memref<72x512xf32, #tpu.memory_space<vmem>>, vector<8x512xf32>
    tpu.vector_store %arg10[%c64, %c0_14], %70 {strides = array<i32>} : memref<72x512xf32, #tpu.memory_space<vmem>>, vector<8x512xf32>,
    %c0_15 = arith.constant 0 : index
    %c0_16 = arith.constant 0 : index
    %72 = vector.load %arg3[%c0_15, %c0_16] : memref<8x72xf32, #tpu.memory_space<vmem>>, vector<8x72xf32>
    %c0_17 = arith.constant 0 : index
    %c0_18 = arith.constant 0 : index
    %73 = vector.load %arg10[%c0_17, %c0_18] : memref<72x512xf32, #tpu.memory_space<vmem>>, vector<72x512xf32>
    %cst = arith.constant dense<0.000000e+00> : vector<8x512xf32>
    %74 = tpu.matmul %72, %73, %cst {dimension_numbers = #tpu.dot_dimension_numbers<[1], [0], [0], [1], [0, 0, 1, 1], [], []>} : vector<8x72xf32>, vector<72x512xf32>, vector<8x512xf32> -> vector<8x512xf32>
    %c0_19 = arith.constant 0 : index
    %c0_20 = arith.constant 0 : index
    %75 = vector.load %arg4[%c0_19, %c0_20] : memref<8x1xf32, #tpu.memory_space<vmem>>, vector<8x1xf32>
    %76 = vector.broadcast %75 : vector<8x1xf32> to vector<8x512xf32>
    %77 = arith.addf %74, %76 : vector<8x512xf32>
    %cst_21 = arith.constant 5.000000e-01 : f32
    %78 = vector.broadcast %cst_21 : f32 to vector<8x512xf32>
    %79 = arith.mulf %78, %77 : vector<8x512xf32>
    %cst_22 = arith.constant 0.707106769 : f32
    %80 = vector.broadcast %cst_22 : f32 to vector<8x512xf32>
    %81 = arith.mulf %77, %80 : vector<8x512xf32>
    %82 = math.erf %81 : vector<8x512xf32>
    %cst_23 = arith.constant 1.000000e+00 : f32
    %83 = vector.broadcast %cst_23 : f32 to vector<8x512xf32>
    %84 = arith.addf %83, %82 : vector<8x512xf32>
    %85 = arith.mulf %79, %84 : vector<8x512xf32>
    %86 = vector.extract_strided_slice %85 {offsets = [0, 495], sizes = [8, 17], strides = [1, 1]} : vector<8x512xf32> to vector<8x17xf32>
    %87 = vector.extract_strided_slice %85 {offsets = [0, 0], sizes = [8, 495], strides = [1, 1]} : vector<8x512xf32> to vector<8x495xf32>
    %88 = tpu.concatenate %86, %87 in 1 : vector<8x17xf32>, vector<8x495xf32> -> vector<8x512xf32>
    %89 = vector.extract_strided_slice %2 {offsets = [0, 0, 0], sizes = [1, 1, 512], strides = [1, 1, 1]} : vector<9x1x512xf32> to vector<1x1x512xf32>
    %90 = vector.shape_cast %89 : vector<1x1x512xf32> to vector<1x512xf32>
    %91 = vector.broadcast %90 : vector<1x512xf32> to vector<8x512xf32>
    %92 = arith.mulf %88, %91 : vector<8x512xf32>
    %c0_24 = arith.constant 0 : index
    %c0_25 = arith.constant 0 : index
    %93 = vector.load %arg11[%c0_24, %c0_25] : memref<72x512xf32, #tpu.memory_space<vmem>>, vector<8x512xf32>
    tpu.vector_store %arg11[%c0_24, %c0_25], %92 {strides = array<i32>} : memref<72x512xf32, #tpu.memory_space<vmem>>, vector<8x512xf32>,
    %94 = vector.extract_strided_slice %85 {offsets = [0, 496], sizes = [8, 16], strides = [1, 1]} : vector<8x512xf32> to vector<8x16xf32>
    %95 = vector.extract_strided_slice %85 {offsets = [0, 0], sizes = [8, 496], strides = [1, 1]} : vector<8x512xf32> to vector<8x496xf32>
    %96 = tpu.concatenate %94, %95 in 1 : vector<8x16xf32>, vector<8x496xf32> -> vector<8x512xf32>
    %97 = vector.extract_strided_slice %2 {offsets = [1, 0, 0], sizes = [1, 1, 512], strides = [1, 1, 1]} : vector<9x1x512xf32> to vector<1x1x512xf32>
    %98 = vector.shape_cast %97 : vector<1x1x512xf32> to vector<1x512xf32>
    %99 = vector.broadcast %98 : vector<1x512xf32> to vector<8x512xf32>
    %100 = arith.mulf %96, %99 : vector<8x512xf32>
    %c8_26 = arith.constant 8 : index
    %c0_27 = arith.constant 0 : index
    %101 = vector.load %arg11[%c8_26, %c0_27] : memref<72x512xf32, #tpu.memory_space<vmem>>, vector<8x512xf32>
    tpu.vector_store %arg11[%c8_26, %c0_27], %100 {strides = array<i32>} : memref<72x512xf32, #tpu.memory_space<vmem>>, vector<8x512xf32>,
    %102 = vector.extract_strided_slice %85 {offsets = [0, 497], sizes = [8, 15], strides = [1, 1]} : vector<8x512xf32> to vector<8x15xf32>
    %103 = vector.extract_strided_slice %85 {offsets = [0, 0], sizes = [8, 497], strides = [1, 1]} : vector<8x512xf32> to vector<8x497xf32>
    %104 = tpu.concatenate %102, %103 in 1 : vector<8x15xf32>, vector<8x497xf32> -> vector<8x512xf32>
    %105 = vector.extract_strided_slice %2 {offsets = [2, 0, 0], sizes = [1, 1, 512], strides = [1, 1, 1]} : vector<9x1x512xf32> to vector<1x1x512xf32>
    %106 = vector.shape_cast %105 : vector<1x1x512xf32> to vector<1x512xf32>
    %107 = vector.broadcast %106 : vector<1x512xf32> to vector<8x512xf32>
    %108 = arith.mulf %104, %107 : vector<8x512xf32>
    %c16_28 = arith.constant 16 : index
    %c0_29 = arith.constant 0 : index
    %109 = vector.load %arg11[%c16_28, %c0_29] : memref<72x512xf32, #tpu.memory_space<vmem>>, vector<8x512xf32>
    tpu.vector_store %arg11[%c16_28, %c0_29], %108 {strides = array<i32>} : memref<72x512xf32, #tpu.memory_space<vmem>>, vector<8x512xf32>,
    %110 = vector.extract_strided_slice %85 {offsets = [0, 511], sizes = [8, 1], strides = [1, 1]} : vector<8x512xf32> to vector<8x1xf32>
    %111 = vector.extract_strided_slice %85 {offsets = [0, 0], sizes = [8, 511], strides = [1, 1]} : vector<8x512xf32> to vector<8x511xf32>
    %112 = tpu.concatenate %110, %111 in 1 : vector<8x1xf32>, vector<8x511xf32> -> vector<8x512xf32>
    %113 = vector.extract_strided_slice %2 {offsets = [3, 0, 0], sizes = [1, 1, 512], strides = [1, 1, 1]} : vector<9x1x512xf32> to vector<1x1x512xf32>
    %114 = vector.shape_cast %113 : vector<1x1x512xf32> to vector<1x512xf32>
    %115 = vector.broadcast %114 : vector<1x512xf32> to vector<8x512xf32>
    %116 = arith.mulf %112, %115 : vector<8x512xf32>
    %c24_30 = arith.constant 24 : index
    %c0_31 = arith.constant 0 : index
    %117 = vector.load %arg11[%c24_30, %c0_31] : memref<72x512xf32, #tpu.memory_space<vmem>>, vector<8x512xf32>
    tpu.vector_store %arg11[%c24_30, %c0_31], %116 {strides = array<i32>} : memref<72x512xf32, #tpu.memory_space<vmem>>, vector<8x512xf32>,
    %118 = vector.extract_strided_slice %2 {offsets = [4, 0, 0], sizes = [1, 1, 512], strides = [1, 1, 1]} : vector<9x1x512xf32> to vector<1x1x512xf32>
    %119 = vector.shape_cast %118 : vector<1x1x512xf32> to vector<1x512xf32>
    %120 = vector.broadcast %119 : vector<1x512xf32> to vector<8x512xf32>
    %121 = arith.mulf %85, %120 : vector<8x512xf32>
    %c32_32 = arith.constant 32 : index
    %c0_33 = arith.constant 0 : index
    %122 = vector.load %arg11[%c32_32, %c0_33] : memref<72x512xf32, #tpu.memory_space<vmem>>, vector<8x512xf32>
    tpu.vector_store %arg11[%c32_32, %c0_33], %121 {strides = array<i32>} : memref<72x512xf32, #tpu.memory_space<vmem>>, vector<8x512xf32>,
    %123 = vector.extract_strided_slice %85 {offsets = [0, 1], sizes = [8, 511], strides = [1, 1]} : vector<8x512xf32> to vector<8x511xf32>
    %124 = vector.extract_strided_slice %85 {offsets = [0, 0], sizes = [8, 1], strides = [1, 1]} : vector<8x512xf32> to vector<8x1xf32>
    %125 = tpu.concatenate %123, %124 in 1 : vector<8x511xf32>, vector<8x1xf32> -> vector<8x512xf32>
    %126 = vector.extract_strided_slice %2 {offsets = [5, 0, 0], sizes = [1, 1, 512], strides = [1, 1, 1]} : vector<9x1x512xf32> to vector<1x1x512xf32>
    %127 = vector.shape_cast %126 : vector<1x1x512xf32> to vector<1x512xf32>
    %128 = vector.broadcast %127 : vector<1x512xf32> to vector<8x512xf32>
    %129 = arith.mulf %125, %128 : vector<8x512xf32>
    %c40_34 = arith.constant 40 : index
    %c0_35 = arith.constant 0 : index
    %130 = vector.load %arg11[%c40_34, %c0_35] : memref<72x512xf32, #tpu.memory_space<vmem>>, vector<8x512xf32>
    tpu.vector_store %arg11[%c40_34, %c0_35], %129 {strides = array<i32>} : memref<72x512xf32, #tpu.memory_space<vmem>>, vector<8x512xf32>,
    %131 = vector.extract_strided_slice %85 {offsets = [0, 15], sizes = [8, 497], strides = [1, 1]} : vector<8x512xf32> to vector<8x497xf32>
    %132 = vector.extract_strided_slice %85 {offsets = [0, 0], sizes = [8, 15], strides = [1, 1]} : vector<8x512xf32> to vector<8x15xf32>
    %133 = tpu.concatenate %131, %132 in 1 : vector<8x497xf32>, vector<8x15xf32> -> vector<8x512xf32>
    %134 = vector.extract_strided_slice %2 {offsets = [6, 0, 0], sizes = [1, 1, 512], strides = [1, 1, 1]} : vector<9x1x512xf32> to vector<1x1x512xf32>
    %135 = vector.shape_cast %134 : vector<1x1x512xf32> to vector<1x512xf32>
    %136 = vector.broadcast %135 : vector<1x512xf32> to vector<8x512xf32>
    %137 = arith.mulf %133, %136 : vector<8x512xf32>
    %c48_36 = arith.constant 48 : index
    %c0_37 = arith.constant 0 : index
    %138 = vector.load %arg11[%c48_36, %c0_37] : memref<72x512xf32, #tpu.memory_space<vmem>>, vector<8x512xf32>
    tpu.vector_store %arg11[%c48_36, %c0_37], %137 {strides = array<i32>} : memref<72x512xf32, #tpu.memory_space<vmem>>, vector<8x512xf32>,
    %139 = vector.extract_strided_slice %85 {offsets = [0, 16], sizes = [8, 496], strides = [1, 1]} : vector<8x512xf32> to vector<8x496xf32>
    %140 = vector.extract_strided_slice %85 {offsets = [0, 0], sizes = [8, 16], strides = [1, 1]} : vector<8x512xf32> to vector<8x16xf32>
    %141 = tpu.concatenate %139, %140 in 1 : vector<8x496xf32>, vector<8x16xf32> -> vector<8x512xf32>
    %142 = vector.extract_strided_slice %2 {offsets = [7, 0, 0], sizes = [1, 1, 512], strides = [1, 1, 1]} : vector<9x1x512xf32> to vector<1x1x512xf32>
    %143 = vector.shape_cast %142 : vector<1x1x512xf32> to vector<1x512xf32>
    %144 = vector.broadcast %143 : vector<1x512xf32> to vector<8x512xf32>
    %145 = arith.mulf %141, %144 : vector<8x512xf32>
    %c56_38 = arith.constant 56 : index
    %c0_39 = arith.constant 0 : index
    %146 = vector.load %arg11[%c56_38, %c0_39] : memref<72x512xf32, #tpu.memory_space<vmem>>, vector<8x512xf32>
    tpu.vector_store %arg11[%c56_38, %c0_39], %145 {strides = array<i32>} : memref<72x512xf32, #tpu.memory_space<vmem>>, vector<8x512xf32>,
    %147 = vector.extract_strided_slice %85 {offsets = [0, 17], sizes = [8, 495], strides = [1, 1]} : vector<8x512xf32> to vector<8x495xf32>
    %148 = vector.extract_strided_slice %85 {offsets = [0, 0], sizes = [8, 17], strides = [1, 1]} : vector<8x512xf32> to vector<8x17xf32>
    %149 = tpu.concatenate %147, %148 in 1 : vector<8x495xf32>, vector<8x17xf32> -> vector<8x512xf32>
    %150 = vector.extract_strided_slice %2 {offsets = [8, 0, 0], sizes = [1, 1, 512], strides = [1, 1, 1]} : vector<9x1x512xf32> to vector<1x1x512xf32>
    %151 = vector.shape_cast %150 : vector<1x1x512xf32> to vector<1x512xf32>
    %152 = vector.broadcast %151 : vector<1x512xf32> to vector<8x512xf32>
    %153 = arith.mulf %149, %152 : vector<8x512xf32>
    %c64_40 = arith.constant 64 : index
    %c0_41 = arith.constant 0 : index
    %154 = vector.load %arg11[%c64_40, %c0_41] : memref<72x512xf32, #tpu.memory_space<vmem>>, vector<8x512xf32>
    tpu.vector_store %arg11[%c64_40, %c0_41], %153 {strides = array<i32>} : memref<72x512xf32, #tpu.memory_space<vmem>>, vector<8x512xf32>,
    %c0_42 = arith.constant 0 : index
    %c0_43 = arith.constant 0 : index
    %155 = vector.load %arg5[%c0_42, %c0_43] : memref<8x72xf32, #tpu.memory_space<vmem>>, vector<8x72xf32>
    %c0_44 = arith.constant 0 : index
    %c0_45 = arith.constant 0 : index
    %156 = vector.load %arg11[%c0_44, %c0_45] : memref<72x512xf32, #tpu.memory_space<vmem>>, vector<72x512xf32>
    %cst_46 = arith.constant dense<0.000000e+00> : vector<8x512xf32>
    %157 = tpu.matmul %155, %156, %cst_46 {dimension_numbers = #tpu.dot_dimension_numbers<[1], [0], [0], [1], [0, 0, 1, 1], [], []>} : vector<8x72xf32>, vector<72x512xf32>, vector<8x512xf32> -> vector<8x512xf32>
    %c0_47 = arith.constant 0 : index
    %c0_48 = arith.constant 0 : index
    %158 = vector.load %arg6[%c0_47, %c0_48] : memref<8x1xf32, #tpu.memory_space<vmem>>, vector<8x1xf32>
    %159 = vector.broadcast %158 : vector<8x1xf32> to vector<8x512xf32>
    %160 = arith.addf %157, %159 : vector<8x512xf32>
    %c0_49 = arith.constant 0 : index
    %c0_50 = arith.constant 0 : index
    %161 = vector.load %arg7[%c0_49, %c0_50] : memref<8x8xf32, #tpu.memory_space<vmem>>, vector<8x8xf32>
    %cst_51 = arith.constant dense<0.000000e+00> : vector<8x512xf32>
    %162 = tpu.matmul %161, %1, %cst_51 {dimension_numbers = #tpu.dot_dimension_numbers<[1], [0], [0], [1], [0, 0, 1, 1], [], []>} : vector<8x8xf32>, vector<8x512xf32>, vector<8x512xf32> -> vector<8x512xf32>
    %163 = arith.addf %162, %160 : vector<8x512xf32>
    %cst_52 = arith.constant 5.000000e-01 : f32
    %164 = vector.broadcast %cst_52 : f32 to vector<8x512xf32>
    %165 = arith.mulf %164, %163 : vector<8x512xf32>
    %cst_53 = arith.constant 0.707106769 : f32
    %166 = vector.broadcast %cst_53 : f32 to vector<8x512xf32>
    %167 = arith.mulf %163, %166 : vector<8x512xf32>
    %168 = math.erf %167 : vector<8x512xf32>
    %cst_54 = arith.constant 1.000000e+00 : f32
    %169 = vector.broadcast %cst_54 : f32 to vector<8x512xf32>
    %170 = arith.addf %169, %168 : vector<8x512xf32>
    %171 = arith.mulf %165, %170 : vector<8x512xf32>
    %172 = vector.extract_strided_slice %171 {offsets = [0, 0], sizes = [8, 256], strides = [1, 1]} : vector<8x512xf32> to vector<8x256xf32>
    %c0_55 = arith.constant 0 : index
    %c0_56 = arith.constant 0 : index
    %173 = vector.load %arg8[%c0_55, %c0_56] : memref<256x64xf32, #tpu.memory_space<vmem>>, vector<256x64xf32>
    %cst_57 = arith.constant dense<0.000000e+00> : vector<8x64xf32>
    %174 = tpu.matmul %172, %173, %cst_57 {dimension_numbers = #tpu.dot_dimension_numbers<[1], [0], [0], [1], [0, 0, 1, 1], [], []>} : vector<8x256xf32>, vector<256x64xf32>, vector<8x64xf32> -> vector<8x64xf32>
    %175 = vector.extract_strided_slice %171 {offsets = [0, 256], sizes = [8, 256], strides = [1, 1]} : vector<8x512xf32> to vector<8x256xf32>
    %c0_58 = arith.constant 0 : index
    %c0_59 = arith.constant 0 : index
    %176 = vector.load %arg8[%c0_58, %c0_59] : memref<256x64xf32, #tpu.memory_space<vmem>>, vector<256x64xf32>
    %cst_60 = arith.constant dense<0.000000e+00> : vector<8x64xf32>
    %177 = tpu.matmul %175, %176, %cst_60 {dimension_numbers = #tpu.dot_dimension_numbers<[1], [0], [0], [1], [0, 0, 1, 1], [], []>} : vector<8x256xf32>, vector<256x64xf32>, vector<8x64xf32> -> vector<8x64xf32>
    %178 = tpu.concatenate %174, %177 in 1 : vector<8x64xf32>, vector<8x64xf32> -> vector<8x128xf32>
    %c0_61 = arith.constant 0 : index
    %c0_62 = arith.constant 0 : index
    %c0_63 = arith.constant 0 : index
    %179 = vector.load %arg9[%c0_61, %c0_62, %c0_63] : memref<1x8x128xf32, #tpu.memory_space<vmem>>, vector<1x8x128xf32>
    %180 = vector.shape_cast %179 : vector<1x8x128xf32> to vector<8x128xf32>
    %181 = vector.shape_cast %178 : vector<8x128xf32> to vector<1x8x128xf32>
    tpu.vector_store %arg9[%c0_61, %c0_62, %c0_63], %181 {strides = array<i32>} : memref<1x8x128xf32, #tpu.memory_space<vmem>>, vector<1x8x128xf32>,
    return
  }
  func.func @transform_0(%arg0: i32) -> (i32, i32, i32) {
    %c0_i32 = arith.constant 0 : i32
    %c0_i32_0 = arith.constant 0 : i32
    %c0_i32_1 = arith.constant 0 : i32
    return %arg0, %c0_i32, %c0_i32_0 : i32, i32, i32
  }
  func.func @transform_1(%arg0: i32) -> (i32, i32, i32) {
    %c0_i32 = arith.constant 0 : i32
    %c0_i32_0 = arith.constant 0 : i32
    %c0_i32_1 = arith.constant 0 : i32
    %c0_i32_2 = arith.constant 0 : i32
    return %c0_i32, %c0_i32_0, %c0_i32_1 : i32, i32, i32
  }
  func.func @transform_2(%arg0: i32) -> (i32, i32) {
    %c0_i32 = arith.constant 0 : i32
    %c0_i32_0 = arith.constant 0 : i32
    %c0_i32_1 = arith.constant 0 : i32
    return %c0_i32, %c0_i32_0 : i32, i32
  }
  func.func @transform_3(%arg0: i32) -> (i32, i32) {
    %c0_i32 = arith.constant 0 : i32
    %c0_i32_0 = arith.constant 0 : i32
    %c0_i32_1 = arith.constant 0 : i32
    return %c0_i32, %c0_i32_0 : i32, i32
  }
  func.func @transform_4(%arg0: i32) -> (i32, i32) {
    %c0_i32 = arith.constant 0 : i32
    %c0_i32_0 = arith.constant 0 : i32
    %c0_i32_1 = arith.constant 0 : i32
    return %c0_i32, %c0_i32_0 : i32, i32
  }
  func.func @transform_5(%arg0: i32) -> (i32, i32) {
    %c0_i32 = arith.constant 0 : i32
    %c0_i32_0 = arith.constant 0 : i32
    %c0_i32_1 = arith.constant 0 : i32
    return %c0_i32, %c0_i32_0 : i32, i32
  }
  func.func @transform_6(%arg0: i32) -> (i32, i32) {
    %c0_i32 = arith.constant 0 : i32
    %c0_i32_0 = arith.constant 0 : i32
    %c0_i32_1 = arith.constant 0 : i32
    return %c0_i32, %c0_i32_0 : i32, i32
  }
  func.func @transform_7(%arg0: i32) -> (i32, i32) {
    %c0_i32 = arith.constant 0 : i32
    %c0_i32_0 = arith.constant 0 : i32
    %c0_i32_1 = arith.constant 0 : i32
    return %c0_i32, %c0_i32_0 : i32, i32
  }
  func.func @transform_8(%arg0: i32) -> (i32, i32, i32) {
    %c0_i32 = arith.constant 0 : i32
    %c0_i32_0 = arith.constant 0 : i32
    %c0_i32_1 = arith.constant 0 : i32
    return %arg0, %c0_i32, %c0_i32_0 : i32, i32, i32
  }
}

</mosaic_0001>

<bundles_post_ra>
// kernel: tpu_custom_call.1
= control target key start
LH: loop header
LB: loop body
LE: loop exit
PB: predicated region body
PF: predicated region fallthrough
CT: control target
= control target key end

     0   :  { %s1548_s9 = smov 111   ;;  %s2242_s0 = inlined_call_operand.vmem [shape: f32[1,8,512], index: 0, kind: input, shape index: {}]   ;;  %s2243_s1 = inlined_call_operand.vmem [shape: f32[9,1,512], index: 1, kind: input, shape index: {}]   ;;  %s2244_s2 = inlined_call_operand.vmem [shape: f32[8,72], index: 2, kind: input, shape index: {}]   ;;  %s2245_s3 = inlined_call_operand.vmem [shape: f32[8,1], index: 3, kind: input, shape index: {}]   ;;  %s2246_s4 = inlined_call_operand.vmem [shape: f32[8,72], index: 4, kind: input, shape index: {}]   ;;  %s2247_s5 = inlined_call_operand.vmem [shape: f32[8,1], index: 5, kind: input, shape index: {}]   ;;  %s2248_s6 = inlined_call_operand.vmem [shape: f32[8,8], index: 6, kind: input, shape index: {}]   ;;  %s2249_s7 = inlined_call_operand.vmem [shape: f32[256,64], index: 7, kind: input, shape index: {}]   ;;  %s2250_s8 = inlined_call_operand.hbm [shape: f32[1,8,128], index: 8, kind: output, shape index: {}]  }
   0x1   :  { %v1608_v0 = vld [vmem:[%s2242_s0 + $0x10] sm:$0xff]  ;;  %v1613_v1 = vld [vmem:[%s2242_s0] sm:$0xff]  ;;  %v1622_v2 = vld [vmem:[%s2242_s0 + $0x18] sm:$0xff] }
   0x2   :  { %2260 = vst [vmem:[#allocation7_spill] sm:$0xff] %v1613_v1  ;;  %409 = vrot.lane.b32.xlu1 %v1608_v0, %s1548_s9  ;;  %405 = vrot.lane.b32.xlu0 %v1613_v1, %s1548_s9 }
   0x3   :  { %13 = vsyncpa [#allocation5], 0  ;;  %s1549_s12 = smov 112   ;;  %v1631_v3 = vld [vmem:[%s2242_s0 + $0x8] sm:$0xff]  ;;  %s1550_s15 = smov 113   ;;  %v2251_v4 = vmov 0.0   ;;  %v66_v7 = vlaneseq }
   0x4   :  { %2261 = vst [vmem:[#allocation8_spill] sm:$0xff] %v1631_v3  ;;  %s1551_s0 = smov 127   ;;  %s1552_s16 = smov 1   ;;  %634 = vmatprep.mubr.f32.mxu1 %v2251_v4  ;;  %563 = vmatprep.mubr.f32.mxu0 %v2251_v4  ;;  %v1557_v5 = vmov 0   ;;  %v489_v6 = vld [vmem:[%s2245_s3] sm:$0xff]  ;;  %vm413_vm0 = vcmask 908288  }
   0x5   :  { %s1553_s17 = smov 15   ;;  %s1554_s18 = smov 16   ;;  %1509 = vset.pattern.permute.xlu0 %v1557_v5  ;;  %v67_v8 = vshrl.u32 %v66_v7, 7  ;;  %v42_v11 = vld [vmem:[%s2243_s1 + $0x20] sm:$0xf]  ;;  %vm366_vm1 = vcmask 916480  }
   0x6   :  { %358 = vrot.lane.b32.xlu1 %v1613_v1, %s1549_s12  ;;  %411 = vrot.lane.b32.xlu0 %v1622_v2, %s1548_s9  ;;  %s1556_s19 = smov 17   ;;  %v41_v15 = vld [vmem:[%s2243_s1 + $0x1c] sm:$0xf]  ;;  %v40_v37 = vld [vmem:[%s2243_s1 + $0x18] sm:$0xf]  ;;  %vm319_vm2 = vcmask 924672  }
   0x7   :  { %v1694_v9 = vsub.s32 3, %v67_v8  ;;  %v1696_v10 = vsub.s32 2, %v67_v8  ;;  %v1710_v17 = vsub.s32 1, %v67_v8  ;;  %v1712_v18 = vsub.s32 0, %v67_v8  ;;  %v39_v54 = vld [vmem:[%s2243_s1 + $0x14] sm:$0xf] }
   0x8   :  { %v38_v59 = vld [vmem:[%s2243_s1 + $0x10] sm:$0xf]  ;;  %vm272_vm3 = vcmask 1039360   ;;  %vm197_vm4 = vcmask 7168   ;;  %vm150_vm5 = vcmask 121856   ;;  %vm103_vm6 = vcmask 130048  }
   0x9   :  { %v1702_v14 = vrot.slane %v42_v11, %v1694_v9  ;;  %v1708_v16 = vrot.slane %v42_v11, %v1696_v10  ;;  %v1717_v23 = vrot.slane %v41_v15, %v1694_v9  ;;  %v1722_v26 = vrot.slane %v42_v11, %v1710_v17  ;;  %s1559_s25 = smov [#allocation4]  }
   0xa   :  { %407 = vrot.lane.b32.xlu1 %v1631_v3, %s1548_s9  ;;  %364 = vrot.lane.b32.xlu0 %v1622_v2, %s1549_s12  ;;  %v1725_v27 = vrot.slane %v42_v11, %v1712_v18  ;;  %v1733_v35 = vrot.slane %v41_v15, %v1696_v10  ;;  %v1742_v42 = vrot.slane %v41_v15, %v1712_v18  ;;  %vm56_vm7 = vcmask 138240   ;;  %s1413_s3 = sshll.u32 %s1559_s25, 4  ;;  %s1414_s3 = int_to_ptr.vmem [resolvable:$true] %s1413_s3 }
   0xb   :  { %v1745_v43 = vrot.slane %v41_v15, %v1710_v17  ;;  %v1748_v44 = vrot.slane %v40_v37, %v1694_v9  ;;  %v1757_v53 = vrot.slane %v40_v37, %v1696_v10  ;;  %v1764_v58 = vrot.slane %v40_v37, %v1712_v18  ;;  %s1526_s26 = scalar_lea.vmem %s1414_s3, 128  ;;  %p1531_p1 = scmp.lt.s32.totalorder %s1414_s3, %s1414_s3 }
   0xc   :  { %v1771_v61 = vrot.slane %v40_v37, %v1710_v17  ;;  %v1774_v62 = vrot.slane %v39_v54, %v1694_v9  ;;  %v1780_v7 = vrot.slane %v39_v54, %v1710_v17  ;;  %v1783_v8 = vrot.slane %v39_v54, %v1696_v10  ;;  %p1527_p0 = scmp.ne.s32.totalorder %s1414_s3, %s1526_s26  ;;  %p1532_p2 = scmp.lt.s32.totalorder %s1526_s26, %s1526_s26 }
   0xd   :  { %v1786_v11 = vrot.slane %v38_v59, %v1694_v9  ;;  %vm495_vm8 = vcmask 588800   ;;  %vm1062_vm9 = vcmask 64512   ;;  %vm1404_vm10 = vcmask 523264  }
   0xe   :  { %311 = vrot.lane.b32.xlu1 %v1613_v1, %s1550_s15  ;;  %362 = vrot.lane.b32.xlu0 %v1608_v0, %s1549_s12  ;;  %p1533_p3 = por %p1532_p2, %p1531_p1 }
  0x10   :  { %p1534_p4 = pnand %p1533_p3, %p1527_p0 }
  0x12   :  { %360 = vrot.lane.b32.xlu1 %v1631_v3, %s1549_s12  ;;  %317 = vrot.lane.b32.xlu0 %v1622_v2, %s1550_s15 }
  0x16   :  { %264 = vrot.lane.b32.xlu1 %v1613_v1, %s1551_s0  ;;  %315 = vrot.lane.b32.xlu0 %v1608_v0, %s1550_s15 }
  0x1a   :  { %313 = vrot.lane.b32.xlu1 %v1631_v3, %s1550_s15  ;;  %270 = vrot.lane.b32.xlu0 %v1622_v2, %s1551_s0 }
  0x1e   :  { %266 = vrot.lane.b32.xlu1 %v1631_v3, %s1551_s0  ;;  %268 = vrot.lane.b32.xlu0 %v1608_v0, %s1551_s0 }
  0x22   :  { %195 = vrot.lane.b32.xlu1 %v1608_v0, %s1552_s16  ;;  %188 = vrot.lane.b32.xlu0 %v1622_v2, %s1552_s16 }
  0x26   :  { %141 = vrot.lane.b32.xlu1 %v1622_v2, %s1553_s17  ;;  %193 = vrot.lane.b32.xlu0 %v1631_v3, %s1552_s16 }
  0x2a   :  { %191 = vrot.lane.b32.xlu1 %v1613_v1, %s1552_s16  ;;  %148 = vrot.lane.b32.xlu0 %v1608_v0, %s1553_s17 }
  0x2e   :  { %94 = vrot.lane.b32.xlu1 %v1622_v2, %s1554_s18  ;;  %146 = vrot.lane.b32.xlu0 %v1631_v3, %s1553_s17 }
  0x32   :  { %144 = vrot.lane.b32.xlu1 %v1613_v1, %s1553_s17  ;;  %101 = vrot.lane.b32.xlu0 %v1608_v0, %s1554_s18 }
  0x36   :  { %44 = vrot.lane.b32.xlu1 %v1622_v2, %s1556_s19  ;;  %99 = vrot.lane.b32.xlu0 %v1631_v3, %s1554_s18 }
  0x3a   :  { %97 = vrot.lane.b32.xlu1 %v1613_v1, %s1554_s18  ;;  %54 = vrot.lane.b32.xlu0 %v1608_v0, %s1556_s19 }
  0x3e   :  { %50 = vrot.lane.b32.xlu1 %v1613_v1, %s1556_s19  ;;  %52 = vrot.lane.b32.xlu0 %v1631_v3, %s1556_s19 }
  0x42   :  { %492 = vperm.xlu0 %1509, %v489_v6   ;;  %v1777_v6 = vrot.slane %v39_v54, %v1712_v18 }
  0x74   :  { %v410_v12 = vpop.permute.xlu1 %409  ;;  %v406_v13 = vpop.permute.xlu0 %405 }
  0x78   :  { %v359_v19 = vpop.permute.xlu1 %358  ;;  %v412_v20 = vpop.permute.xlu0 %411 }
  0x79   :  { %v416_v21 = vsel %vm413_vm0, %v410_v12, %v412_v20  ;;  %v422_v22 = vsel %vm413_vm0, %v412_v20, %v406_v13  ;;  %v1795_v20 = vrot.slane %v38_v59, %v1696_v10 }
  0x7a   :  { %v447_v24 = vmul.f32 %v1702_v14, %v422_v22  ;;  %v446_v25 = vmul.f32 %v1708_v16, %v416_v21 }
  0x7b   :  { %v258_v37 = vmul.f32 %v1795_v20, %v1608_v0 }
  0x7c   :  { %v408_v28 = vpop.permute.xlu1 %407  ;;  %584 = vmatprep.subr.mxu1 %v447_v24  ;;  %v365_v29 = vpop.permute.xlu0 %364 }
  0x7d   :  { %v414_v30 = vsel %vm413_vm0, %v406_v13, %v408_v28  ;;  %v375_v31 = vsel %vm366_vm1, %v365_v29, %v359_v19  ;;  %585 = vmatpush1.msra.mxu1 %v446_v25  ;;  %v415_v32 = vsel %vm413_vm0, %v408_v28, %v410_v12  ;;  %v1801_v25 = vrot.slane %v38_v59, %v1710_v17 }
  0x7e   :  { %v400_v33 = vmul.f32 %v1717_v23, %v375_v31  ;;  %v445_v34 = vmul.f32 %v1722_v26, %v415_v32  ;;  %v444_v36 = vmul.f32 %v1725_v27, %v414_v30  ;;  %v1804_v28 = vrot.slane %v38_v59, %v1712_v18 }
  0x7f   :  { %v259_v32 = vmul.f32 %v1786_v11, %v1622_v2 }
  0x80   :  { %513 = vmatprep.subr.mxu0 %v445_v34  ;;  %v312_v38 = vpop.permute.xlu1 %311  ;;  %586 = vmatprep.subr.mxu1 %v400_v33  ;;  %v363_v39 = vpop.permute.xlu0 %362 }
  0x81   :  { %v369_v40 = vsel %vm366_vm1, %v363_v39, %v365_v29  ;;  %514 = vmatpush1.msra.mxu0 %v444_v36 }
  0x82   :  { %v399_v41 = vmul.f32 %v1733_v35, %v369_v40 }
  0x84   :  { %v361_v45 = vpop.permute.xlu1 %360  ;;  %587 = vmatpush1.msra.mxu1 %v399_v41  ;;  %v318_v46 = vpop.permute.xlu0 %317  ;;  %v257_v41 = vmul.f32 %v1801_v25, %v1631_v3 }
  0x85   :  { %v367_v47 = vsel %vm366_vm1, %v359_v19, %v361_v45  ;;  %v368_v48 = vsel %vm366_vm1, %v361_v45, %v363_v39  ;;  %v328_v49 = vsel %vm319_vm2, %v318_v46, %v312_v38  ;;  %v37_v19 = vld [vmem:[%s2243_s1 + $0xc] sm:$0xf]  ;;  %v256_v45 = vmul.f32 %v1804_v28, %v1613_v1 }
  0x86   :  { %v397_v50 = vmul.f32 %v1742_v42, %v367_v47  ;;  %v398_v51 = vmul.f32 %v1745_v43, %v368_v48  ;;  %v353_v52 = vmul.f32 %v1748_v44, %v328_v49  ;;  %v1807_v31 = vrot.slane %v37_v19, %v1694_v9 }
  0x87   :  { %v1837_v59 = vrot.slane %v37_v19, %v1710_v17 }
  0x88   :  { %v265_v55 = vpop.permute.xlu1 %264  ;;  %515 = vmatprep.subr.mxu0 %v398_v51  ;;  %588 = vmatprep.subr.mxu1 %v353_v52  ;;  %v316_v56 = vpop.permute.xlu0 %315  ;;  %v36_v51 = vld [vmem:[%s2243_s1 + $0x8] sm:$0xf] }
  0x89   :  { %v322_v57 = vsel %vm319_vm2, %v316_v56, %v318_v46  ;;  %516 = vmatpush1.msra.mxu0 %v397_v50  ;;  %v1826_v50 = vrot.slane %v37_v19, %v1696_v10 }
  0x8a   :  { %v352_v60 = vmul.f32 %v1757_v53, %v322_v57 }
  0x8c   :  { %v314_v63 = vpop.permute.xlu1 %313  ;;  %589 = vmatpush1.msra.mxu1 %v352_v60  ;;  %v271_v5 = vpop.permute.xlu0 %270  ;;  %v1840_v60 = vrot.slane %v36_v51, %v1694_v9 }
  0x8d   :  { %v320_v12 = vsel %vm319_vm2, %v312_v38, %v314_v63  ;;  %v321_v13 = vsel %vm319_vm2, %v314_v63, %v316_v56  ;;  %v281_v15 = vsel %vm272_vm3, %v271_v5, %v265_v55  ;;  %v1833_v56 = vrot.slane %v37_v19, %v1712_v18 }
  0x8e   :  { %v350_v21 = vmul.f32 %v1764_v58, %v320_v12  ;;  %v351_v22 = vmul.f32 %v1771_v61, %v321_v13  ;;  %v306_v24 = vmul.f32 %v1774_v62, %v281_v15 }
  0x90   :  { %v267_v29 = vpop.permute.xlu1 %266  ;;  %517 = vmatprep.subr.mxu0 %v351_v22  ;;  %590 = vmatprep.subr.mxu1 %v306_v24  ;;  %v269_v30 = vpop.permute.xlu0 %268  ;;  %v1849_v24 = vrot.slane %v36_v51, %v1696_v10 }
  0x91   :  { %v273_v33 = vsel %vm272_vm3, %v265_v55, %v267_v29  ;;  %v274_v34 = vsel %vm272_vm3, %v267_v29, %v269_v30  ;;  %v275_v36 = vsel %vm272_vm3, %v269_v30, %v271_v5  ;;  %518 = vmatpush1.msra.mxu0 %v350_v21  ;;  %v35_v29 = vld [vmem:[%s2243_s1 + $0x4] sm:$0xf] }
  0x92   :  { %v303_v38 = vmul.f32 %v1777_v6, %v273_v33  ;;  %v304_v39 = vmul.f32 %v1780_v7, %v274_v34  ;;  %v305_v40 = vmul.f32 %v1783_v8, %v275_v36  ;;  %v1856_v34 = vrot.slane %v36_v51, %v1712_v18 }
  0x94   :  { %v196_v46 = vpop.permute.xlu1 %195  ;;  %519 = vmatprep.subr.mxu0 %v304_v39  ;;  %591 = vmatpush1.msra.mxu1 %v305_v40  ;;  %v189_v47 = vpop.permute.xlu0 %188  ;;  %2262 = vst [vmem:[#allocation9_spill] sm:$0xff] %v1856_v34 }
  0x95   :  { %v200_v48 = vsel %vm197_vm4, %v196_v46, %v189_v47  ;;  %520 = vmatpush1.msra.mxu0 %v303_v38  ;;  %592 = vmatprep.subr.mxu1 %v259_v32  ;;  %v1863_v38 = vrot.slane %v35_v29, %v1694_v9 }
  0x96   :  { %v230_v49 = vmul.f32 %v1807_v31, %v200_v48  ;;  %593 = vmatpush1.msra.mxu1 %v258_v37  ;;  %521 = vmatprep.subr.mxu0 %v257_v41  ;;  %v1860_v37 = vrot.slane %v36_v51, %v1710_v17  ;;  %v1872_v51 = vrot.slane %v35_v29, %v1696_v10 }
  0x97   :  { %522 = vmatpush1.msra.mxu0 %v256_v45 }
  0x98   :  { %v142_v52 = vpop.permute.xlu1 %141  ;;  %594 = vmatprep.subr.mxu1 %v230_v49  ;;  %v194_v54 = vpop.permute.xlu0 %193 }
  0x99   :  { %v199_v55 = vsel %vm197_vm4, %v194_v54, %v196_v46 }
  0x9a   :  { %v229_v57 = vmul.f32 %v1826_v50, %v199_v55 }
  0x9c   :  { %v192_v63 = vpop.permute.xlu1 %191  ;;  %595 = vmatpush1.msra.mxu1 %v229_v57  ;;  %v149_v5 = vpop.permute.xlu0 %148 }
  0x9d   :  { %v198_v12 = vsel %vm197_vm4, %v192_v63, %v194_v54  ;;  %v205_v13 = vsel %vm197_vm4, %v189_v47, %v192_v63  ;;  %v153_v15 = vsel %vm150_vm5, %v149_v5, %v142_v52  ;;  %v34_v54 = vld [vmem:[%s2243_s1] sm:$0xf]  ;;  %v1879_v63 = vrot.slane %v35_v29, %v1712_v18 }
  0x9e   :  { %v227_v21 = vmul.f32 %v1833_v56, %v205_v13  ;;  %v228_v22 = vmul.f32 %v1837_v59, %v198_v12  ;;  %v183_v19 = vmul.f32 %v1840_v60, %v153_v15  ;;  %v1883_v12 = vrot.slane %v35_v29, %v1710_v17 }
  0x9f   :  { %2263 = vst [vmem:[#allocation10_spill] sm:$0xff] %v1879_v63  ;;  %v1886_v13 = vrot.slane %v34_v54, %v1694_v9 }
  0xa0   :  { %v95_v30 = vpop.permute.xlu1 %94  ;;  %596 = vmatprep.subr.mxu1 %v183_v19  ;;  %v147_v32 = vpop.permute.xlu0 %146  ;;  %523 = vmatprep.subr.mxu0 %v228_v22  ;;  %2264 = vst [vmem:[#allocation11_spill] sm:$0xff] %v1883_v12  ;;  %v1889_v22 = vrot.slane %v34_v54, %v1712_v18 }
  0xa1   :  { %v152_v33 = vsel %vm150_vm5, %v147_v32, %v149_v5  ;;  %524 = vmatpush1.msra.mxu0 %v227_v21 }
  0xa2   :  { %v182_v36 = vmul.f32 %v1849_v24, %v152_v33  ;;  %2265 = vst [vmem:[#allocation12_spill] sm:$0xff] %v1889_v22 }
  0xa4   :  { %v145_v39 = vpop.permute.xlu1 %144  ;;  %597 = vmatpush1.msra.mxu1 %v182_v36  ;;  %v102_v40 = vpop.permute.xlu0 %101  ;;  %v1895_v36 = vrot.slane %v34_v54, %v1710_v17 }
  0xa5   :  { %v151_v41 = vsel %vm150_vm5, %v145_v39, %v147_v32  ;;  %v158_v45 = vsel %vm150_vm5, %v142_v52, %v145_v39  ;;  %v106_v46 = vsel %vm103_vm6, %v102_v40, %v95_v30 }
  0xa6   :  { %v180_v47 = vmul.f32 %v1856_v34, %v158_v45  ;;  %v181_v48 = vmul.f32 %v1860_v37, %v151_v41  ;;  %v136_v49 = vmul.f32 %v1863_v38, %v106_v46  ;;  %2266 = vst [vmem:[#allocation13_spill] sm:$0xff] %v1895_v36 }
  0xa8   :  { %v45_v55 = vpop.permute.xlu1 %44  ;;  %598 = vmatprep.subr.mxu1 %v136_v49  ;;  %v100_v57 = vpop.permute.xlu0 %99  ;;  %525 = vmatprep.subr.mxu0 %v181_v48 }
  0xa9   :  { %v105_v52 = vsel %vm103_vm6, %v100_v57, %v102_v40  ;;  %526 = vmatpush1.msra.mxu0 %v180_v47  ;;  %v1901_v40 = vrot.slane %v34_v54, %v1696_v10  ;;  %v452_v10 = vld [vmem:[%s2244_s2] sm:$0xff] }
  0xaa   :  { %v135_v5 = vmul.f32 %v1872_v51, %v105_v52 }
  0xac   :  { %v98_v15 = vpop.permute.xlu1 %97  ;;  %599 = vmatpush1.msra.mxu1 %v135_v5  ;;  %v55_v21 = vpop.permute.xlu0 %54 }
  0xad   :  { %v104_v19 = vsel %vm103_vm6, %v98_v15, %v100_v57  ;;  %v111_v32 = vsel %vm103_vm6, %v95_v30, %v98_v15  ;;  %v59_v33 = vsel %vm56_vm7, %v55_v21, %v45_v55 }
  0xae   :  { %v133_v29 = vmul.f32 %v1879_v63, %v111_v32  ;;  %v134_v9 = vmul.f32 %v1883_v12, %v104_v19  ;;  %v89_v39 = vmul.f32 %v1886_v13, %v59_v33 }
  0xb0   :  { %v51_v18 = vpop.permute.xlu1 %50  ;;  %600 = vmatprep.subr.mxu1 %v89_v39  ;;  %v53_v41 = vpop.permute.xlu0 %52  ;;  %527 = vmatprep.subr.mxu0 %v134_v9 }
  0xb1   :  { %v64_v30 = vsel %vm56_vm7, %v45_v55, %v51_v18  ;;  %v57_v45 = vsel %vm56_vm7, %v51_v18, %v53_v41  ;;  %v58_v17 = vsel %vm56_vm7, %v53_v41, %v55_v21  ;;  %528 = vmatpush1.msra.mxu0 %v133_v29 }
  0xb2   :  { %v86_v46 = vmul.f32 %v1889_v22, %v64_v30  ;;  %v87_v47 = vmul.f32 %v1895_v36, %v57_v45  ;;  %v88_v48 = vmul.f32 %v1901_v40, %v58_v17 }
  0xb4   :  { %529 = vmatprep.subr.mxu0 %v87_v47  ;;  %601 = vmatpush1.msra.mxu1 %v88_v48 }
  0xb5   :  { %530 = vmatpush1.msra.mxu0 %v86_v46  ;;  %1422 = vmatmul.mubr.msk.f32.vlgmr.msra.gmra.mxu1 %vm495_vm8, %v452_v10 }
  0xb6   :  { %1421 = vmatmul.mubr.msk.f32.vlgmr.msra.gmra.mxu0 %vm495_vm8, %v452_v10  ;;  %1054 = vmatprep.mubr.f32.mxu1 %v2251_v4 }
  0xb7   :  { %983 = vmatprep.mubr.f32.mxu0 %v2251_v4 }
  0xbd   :  { %v493_v49 = vpop.permute.xlu0 %492 }
 0x175   :  { %v636_v54 = vpop.f32.mrf.mxu1 }
 0x176   :  { %v637_v55 = vadd.f32 %v636_v54, %v493_v49  ;;  %v565_v57 = vpop.f32.mrf.mxu0 }
 0x177   :  { %v566_v52 = vadd.f32 %v565_v57, %v493_v49  ;;  %v638_v21 = vpop.f32.mrf.mxu1 }
 0x178   :  { %v647_v5 = vmul.f32 0.70710677, %v637_v55  ;;  %v639_v19 = vadd.f32 %v638_v21, %v493_v49  ;;  %v567_v29 = vpop.f32.mrf.mxu0  ;;  %v643_v39 = vmul.f32 0.5, %v637_v55 }
 0x179   :  { %v645_v15 = vmul.f32 0.70710677, %v566_v52  ;;  %v641_v41 = vmul.f32 0.5, %v566_v52  ;;  %v568_v17 = vadd.f32 %v567_v29, %v493_v49 }
 0x17a   :  { %1510 = verf.f32 %v647_v5  ;;  %v648_v32 = vmul.f32 0.70710677, %v639_v19  ;;  %v644_v49 = vmul.f32 0.5, %v639_v19 }
 0x17b   :  { %1512 = verf.f32 %v645_v15  ;;  %v646_v47 = vmul.f32 0.70710677, %v568_v17  ;;  %v642_v52 = vmul.f32 0.5, %v568_v17  ;;  %v910_v15 = vld [vmem:[%s2247_s5] sm:$0xff] }
 0x17c   :  { %1514 = verf.f32 %v648_v32 }
 0x17d   :  { %1516 = verf.f32 %v646_v47 }
 0x187   :  { %v1511_v33 = vpop.eup %1510 }
 0x188   :  { %v1513_v9 = vpop.eup %1512  ;;  %v655_v18 = vadd.f32 1.0, %v1511_v33 }
 0x189   :  { %v653_v30 = vadd.f32 1.0, %v1513_v9  ;;  %v1515_v48 = vpop.eup %1514 }
 0x18a   :  { %v1916_v45 = vmul.f32 %v655_v18, %v643_v39  ;;  %v656_v10 = vadd.f32 1.0, %v1515_v48  ;;  %v1517_v55 = vpop.eup %1516 }
 0x18b   :  { %v1918_v46 = vmul.f32 %v653_v30, %v641_v41  ;;  %v654_v57 = vadd.f32 1.0, %v1517_v55 }
 0x18c   :  { %852 = vrot.lane.b32.xlu0 %v1916_v45, %s1548_s9  ;;  %v1936_v54 = vmul.f32 %v656_v10, %v644_v49 }
 0x18d   :  { %848 = vrot.lane.b32.xlu1 %v1918_v46, %s1548_s9  ;;  %v1950_v5 = vmul.f32 %v654_v57, %v642_v52 }
 0x190   :  { %798 = vrot.lane.b32.xlu0 %v1918_v46, %s1550_s15 }
 0x191   :  { %823 = vrot.lane.b32.xlu1 %v1918_v46, %s1549_s12 }
 0x194   :  { %802 = vrot.lane.b32.xlu0 %v1916_v45, %s1550_s15 }
 0x195   :  { %827 = vrot.lane.b32.xlu1 %v1916_v45, %s1549_s12 }
 0x198   :  { %722 = vrot.lane.b32.xlu0 %v1916_v45, %s1553_s17 }
 0x199   :  { %773 = vrot.lane.b32.xlu1 %v1918_v46, %s1551_s0 }
 0x19c   :  { %829 = vrot.lane.b32.xlu0 %v1936_v54, %s1549_s12 }
 0x19d   :  { %777 = vrot.lane.b32.xlu1 %v1916_v45, %s1551_s0 }
 0x1a0   :  { %779 = vrot.lane.b32.xlu0 %v1936_v54, %s1551_s0 }
 0x1a1   :  { %747 = vrot.lane.b32.xlu1 %v1916_v45, %s1552_s16 }
 0x1a4   :  { %740 = vrot.lane.b32.xlu0 %v1936_v54, %s1552_s16 }
 0x1a5   :  { %697 = vrot.lane.b32.xlu1 %v1916_v45, %s1554_s18 }
 0x1a8   :  { %745 = vrot.lane.b32.xlu0 %v1950_v5, %s1552_s16 }
 0x1a9   :  { %854 = vrot.lane.b32.xlu1 %v1936_v54, %s1548_s9 }
 0x1ac   :  { %690 = vrot.lane.b32.xlu0 %v1936_v54, %s1554_s18 }
 0x1ad   :  { %804 = vrot.lane.b32.xlu1 %v1936_v54, %s1550_s15 }
 0x1b0   :  { %695 = vrot.lane.b32.xlu0 %v1950_v5, %s1554_s18 }
 0x1b1   :  { %715 = vrot.lane.b32.xlu1 %v1936_v54, %s1553_s17 }
 0x1b4   :  { %672 = vrot.lane.b32.xlu0 %v1916_v45, %s1556_s19 }
 0x1b5   :  { %720 = vrot.lane.b32.xlu1 %v1950_v5, %s1553_s17 }
 0x1b8   :  { %850 = vrot.lane.b32.xlu0 %v1950_v5, %s1548_s9 }
 0x1b9   :  { %662 = vrot.lane.b32.xlu1 %v1936_v54, %s1556_s19 }
 0x1bc   :  { %800 = vrot.lane.b32.xlu0 %v1950_v5, %s1550_s15 }
 0x1bd   :  { %670 = vrot.lane.b32.xlu1 %v1950_v5, %s1556_s19 }
 0x1c0   :  { %743 = vrot.lane.b32.xlu0 %v1918_v46, %s1552_s16 }
 0x1c1   :  { %825 = vrot.lane.b32.xlu1 %v1950_v5, %s1549_s12 }
 0x1c4   :  { %693 = vrot.lane.b32.xlu0 %v1918_v46, %s1554_s18 }
 0x1c5   :  { %775 = vrot.lane.b32.xlu1 %v1950_v5, %s1551_s0 }
 0x1c8   :  { %913 = vperm.xlu0 %1509, %v910_v15  }
 0x1c9   :  { %718 = vrot.lane.b32.xlu1 %v1918_v46, %s1553_s17 }
 0x1cd   :  { %668 = vrot.lane.b32.xlu1 %v1918_v46, %s1556_s19 }
 0x1fe   :  { %v1991_v21 = vpop.permute.xlu0 %852 }
 0x1ff   :  { %v1993_v19 = vpop.permute.xlu1 %848 }
 0x202   :  { %v1995_v32 = vpop.permute.xlu0 %798 }
 0x203   :  { %v1997_v33 = vpop.permute.xlu1 %823 }
 0x206   :  { %v1999_v29 = vpop.permute.xlu0 %802 }
 0x207   :  { %v2001_v9 = vpop.permute.xlu1 %827 }
 0x20a   :  { %v723_v39 = vpop.permute.xlu0 %722 }
 0x20b   :  { %v2003_v18 = vpop.permute.xlu1 %773 }
 0x20e   :  { %v830_v41 = vpop.permute.xlu0 %829 }
 0x20f   :  { %v2005_v30 = vpop.permute.xlu1 %777  ;;  %v839_v57 = vsel %vm366_vm1, %v830_v41, %v1997_v33  ;;  %v833_v4 = vsel %vm366_vm1, %v2001_v9, %v830_v41 }
 0x210   :  { %v843_v36 = vmul.f32 %v839_v57, %v1717_v23  ;;  %v842_v12 = vmul.f32 %v833_v4, %v1733_v35 }
 0x212   :  { %v780_v17 = vpop.permute.xlu0 %779 }
 0x213   :  { %v748_v47 = vpop.permute.xlu1 %747  ;;  %v789_v34 = vsel %vm272_vm3, %v780_v17, %v2003_v18 }
 0x214   :  { %v793_v4 = vmul.f32 %v789_v34, %v1774_v62  ;;  %v767_v34 = vmul.f32 %v1916_v45, %v1795_v20 }
 0x216   :  { %v2007_v48 = vpop.permute.xlu0 %740 }
 0x217   :  { %v698_v10 = vpop.permute.xlu1 %697 }
 0x21a   :  { %v2009_v49 = vpop.permute.xlu0 %745 }
 0x21b   :  { %v855_v55 = vpop.permute.xlu1 %854 }
 0x21c   :  { %v858_v52 = vsel %vm413_vm0, %v1991_v21, %v855_v55  ;;  %v864_v15 = vsel %vm413_vm0, %v855_v55, %v1993_v19 }
 0x21d   :  { %v867_v1 = vmul.f32 %v858_v52, %v1708_v16  ;;  %v868_v3 = vmul.f32 %v864_v15, %v1702_v14  ;;  %v783_v14 = vsel %vm272_vm3, %v2005_v30, %v780_v17 }
 0x21e   :  { %v2021_v22 = vpop.permute.xlu0 %690  ;;  %v792_v57 = vmul.f32 %v783_v14, %v1783_v8 }
 0x21f   :  { %1004 = vmatprep.subr.mxu1 %v868_v3  ;;  %v805_v63 = vpop.permute.xlu1 %804  ;;  %v701_v17 = vsel %vm103_vm6, %v698_v10, %v2021_v22 }
 0x220   :  { %v808_v55 = vsel %vm319_vm2, %v1999_v29, %v805_v63  ;;  %v814_v41 = vsel %vm319_vm2, %v805_v63, %v1995_v32  ;;  %1005 = vmatpush1.msra.mxu1 %v867_v1  ;;  %v751_v1 = vsel %vm197_vm4, %v748_v47, %v2007_v48  ;;  %v710_v45 = vmul.f32 %v701_v17, %v1863_v38 }
 0x221   :  { %v817_v16 = vmul.f32 %v808_v55, %v1757_v53  ;;  %v818_v3 = vmul.f32 %v814_v41, %v1748_v44  ;;  %1006 = vmatprep.subr.mxu1 %v843_v36  ;;  %v750_v53 = vsel %vm197_vm4, %v2009_v49, %v748_v47  ;;  %v768_v44 = vmul.f32 %v1936_v54, %v1786_v11 }
 0x222   :  { %v2035_v23 = vpop.permute.xlu0 %695  ;;  %1007 = vmatpush1.msra.mxu1 %v842_v12  ;;  %v760_v8 = vmul.f32 %v751_v1, %v1807_v31  ;;  %v759_v36 = vmul.f32 %v750_v53, %v1826_v50 }
 0x223   :  { %1008 = vmatprep.subr.mxu1 %v818_v3  ;;  %v2038_v35 = vpop.permute.xlu1 %715  ;;  %v700_v54 = vsel %vm103_vm6, %v2035_v23, %v698_v10 }
 0x224   :  { %1009 = vmatpush1.msra.mxu1 %v817_v16  ;;  %v726_v63 = vsel %vm150_vm5, %v723_v39, %v2038_v35  ;;  %v709_v10 = vmul.f32 %v700_v54, %v1872_v51  ;;  %v2274_v54 = vld [vmem:[#allocation7_spill] sm:$0xff] }
 0x225   :  { %1010 = vmatprep.subr.mxu1 %v793_v4  ;;  %v735_v47 = vmul.f32 %v726_v63, %v1840_v60 }
 0x226   :  { %v673_v62 = vpop.permute.xlu0 %672  ;;  %1011 = vmatpush1.msra.mxu1 %v792_v57 }
 0x227   :  { %1012 = vmatprep.subr.mxu1 %v768_v44  ;;  %v2052_v12 = vpop.permute.xlu1 %720 }
 0x228   :  { %v725_v11 = vsel %vm150_vm5, %v2052_v12, %v723_v39  ;;  %1013 = vmatpush1.msra.mxu1 %v767_v34 }
 0x229   :  { %v734_v20 = vmul.f32 %v725_v11, %v1849_v24  ;;  %1014 = vmatprep.subr.mxu1 %v760_v8  ;;  %v2273_v11 = vld [vmem:[#allocation8_spill] sm:$0xff] }
 0x22a   :  { %v851_v31 = vpop.permute.xlu0 %850  ;;  %1015 = vmatpush1.msra.mxu1 %v759_v36  ;;  %v2271_v36 = vld [vmem:[#allocation13_spill] sm:$0xff] }
 0x22b   :  { %v856_v50 = vsel %vm413_vm0, %v1993_v19, %v851_v31  ;;  %v857_v52 = vsel %vm413_vm0, %v851_v31, %v1991_v21  ;;  %1016 = vmatprep.subr.mxu1 %v735_v47  ;;  %v2068_v39 = vpop.permute.xlu1 %662  ;;  %v1258_v47 = vld [vmem:[%s2249_s7 + $0xf0] sm:$0xff]  ;;  %v1257_v31 = vld [vmem:[%s2249_s7 + $0xe8] sm:$0xff] }
 0x22c   :  { %v865_v60 = vmul.f32 %v856_v50, %v1725_v27  ;;  %v866_v24 = vmul.f32 %v857_v52, %v1722_v26  ;;  %v676_v15 = vsel %vm56_vm7, %v673_v62, %v2068_v39  ;;  %1017 = vmatpush1.msra.mxu1 %v734_v20  ;;  %v2081_v26 = vld [vmem:[%s2246_s4] sm:$0xff]  ;;  %v1242_v20 = vld [vmem:[%s2249_s7 + $0x70] sm:$0xff] }
 0x22d   :  { %v685_v38 = vmul.f32 %v676_v15, %v1886_v13  ;;  %1018 = vmatprep.subr.mxu1 %v710_v45  ;;  %v1241_v45 = vld [vmem:[%s2249_s7 + $0x68] sm:$0xff]  ;;  %v1256_v50 = vld [vmem:[%s2249_s7 + $0xe0] sm:$0xff] }
 0x22e   :  { %933 = vmatprep.subr.mxu0 %v866_v24  ;;  %1019 = vmatpush1.msra.mxu1 %v709_v10  ;;  %v801_v19 = vpop.permute.xlu0 %800  ;;  %v1240_v52 = vld [vmem:[%s2249_s7 + $0x60] sm:$0xff]  ;;  %v1239_v10 = vld [vmem:[%s2249_s7 + $0x58] sm:$0xff]  ;;  %v1238_v24 = vld [vmem:[%s2249_s7 + $0x50] sm:$0xff] }
 0x22f   :  { %934 = vmatpush1.msra.mxu0 %v865_v60  ;;  %1020 = vmatprep.subr.mxu1 %v685_v38  ;;  %v671_v21 = vpop.permute.xlu1 %670  ;;  %v807_v13 = vsel %vm319_vm2, %v801_v19, %v1999_v29  ;;  %v806_v16 = vsel %vm319_vm2, %v1995_v32, %v801_v19  ;;  %v1254_v60 = vld [vmem:[%s2249_s7 + $0xd0] sm:$0xff]  ;;  %v1253_v15 = vld [vmem:[%s2249_s7 + $0xc8] sm:$0xff]  ;;  %v1252_v19 = vld [vmem:[%s2249_s7 + $0xc0] sm:$0xff] }
 0x230   :  { %v675_v55 = vsel %vm56_vm7, %v671_v21, %v673_v62  ;;  %v816_v57 = vmul.f32 %v807_v13, %v1771_v61  ;;  %v1237_v38 = vld [vmem:[%s2249_s7 + $0x48] sm:$0xff] }
 0x231   :  { %v684_v51 = vmul.f32 %v675_v55, %v1901_v40  ;;  %v1259_v40 = vld [vmem:[%s2249_s7 + $0xf8] sm:$0xff]  ;;  %v1249_v13 = vld [vmem:[%s2249_s7 + $0xa8] sm:$0xff] }
 0x232   :  { %v744_v3 = vpop.permute.xlu0 %743  ;;  %v1251_v55 = vld [vmem:[%s2249_s7 + $0xb8] sm:$0xff] }
 0x233   :  { %1021 = vmatpush1.msra.mxu1 %v684_v51  ;;  %v826_v27 = vpop.permute.xlu1 %825  ;;  %v749_v53 = vsel %vm197_vm4, %v744_v3, %v2009_v49  ;;  %v1235_v51 = vld [vmem:[%s2249_s7 + $0x38] sm:$0xff] }
 0x234   :  { %v831_v41 = vsel %vm366_vm1, %v1997_v33, %v826_v27  ;;  %v832_v14 = vsel %vm366_vm1, %v826_v27, %v2001_v9  ;;  %1424 = vmatmul.mubr.msk.f32.vlgmr.msra.gmra.mxu1 %vm495_vm8, %v2081_v26  ;;  %1167 = vmatprep.subr.mxu1 %v1622_v2  ;;  %v2267_v33 = vmov 0.0   ;;  %v1061_v9 = vld [vmem:[%s2248_s6] sm:$0xff]  ;;  %v815_v2 = vmul.f32 %v806_v16, %v1764_v58  ;;  %v1234_v27 = vld [vmem:[%s2249_s7 + $0x30] sm:$0xff]  ;;  %v1247_v16 = vld [vmem:[%s2249_s7 + $0x98] sm:$0xff] }
 0x235   :  { %v840_v4 = vmul.f32 %v831_v41, %v1742_v42  ;;  %v841_v29 = vmul.f32 %v832_v14, %v1745_v43  ;;  %1201 = vmatprep.mubr.f32.mxu1 %v2267_v33  ;;  %1168 = vmatpush1.msra.mxu1 %v1608_v0  ;;  %v1243_v42 = vld [vmem:[%s2249_s7 + $0x78] sm:$0xff]  ;;  %v756_v58 = vsel %vm197_vm4, %v2007_v48, %v744_v3  ;;  %v1233_v41 = vld [vmem:[%s2249_s7 + $0x28] sm:$0xff]  ;;  %v1248_v14 = vld [vmem:[%s2249_s7 + $0xa0] sm:$0xff] }
 0x236   :  { %1462 = vmatprep.subr.mxu1 %v1259_v40  ;;  %v758_v49 = vmul.f32 %v749_v53, %v1837_v59  ;;  %v757_v48 = vmul.f32 %v756_v58, %v1833_v56  ;;  %v1231_v3 = vld [vmem:[%s2249_s7 + $0x18] sm:$0xff] }
 0x237   :  { %935 = vmatprep.subr.mxu0 %v841_v29  ;;  %v776_v32 = vpop.permute.xlu1 %775  ;;  %v1230_v29 = vld [vmem:[%s2249_s7 + $0x10] sm:$0xff] }
 0x238   :  { %v781_v43 = vsel %vm272_vm3, %v2003_v18, %v776_v32  ;;  %v782_v0 = vsel %vm272_vm3, %v776_v32, %v2005_v30  ;;  %936 = vmatpush1.msra.mxu0 %v840_v4  ;;  %1426 = vmatmul.mubr.msk.f32.vlgmr.msra.gmra.mxu1 %vm1062_vm9, %v1061_v9  ;;  %v694_v18 = vpop.permute.xlu0 %693  ;;  %v766_v30 = vmul.f32 %v1950_v5, %v1801_v25  ;;  %v1246_v4 = vld [vmem:[%s2249_s7 + $0x90] sm:$0xff]  ;;  %v1228_v32 = vld [vmem:[%s2249_s7] sm:$0xff] }
 0x239   :  { %v790_v1 = vmul.f32 %v781_v43, %v1777_v6  ;;  %v791_v61 = vmul.f32 %v782_v0, %v1780_v7  ;;  %937 = vmatprep.subr.mxu0 %v816_v57  ;;  %1463 = vmatpush3.msra.mxu1 %v1243_v42  ;;  %v765_v7 = vmul.f32 %v1918_v46, %v1804_v28  ;;  %v2268_v28 = vld [vmem:[#allocation9_spill] sm:$0xff]  ;;  %v1244_v57 = vld [vmem:[%s2249_s7 + $0x80] sm:$0xff] }
 0x23a   :  { %938 = vmatpush1.msra.mxu0 %v815_v2  ;;  %v699_v62 = vsel %vm103_vm6, %v694_v18, %v2035_v23  ;;  %v706_v25 = vsel %vm103_vm6, %v2021_v22, %v694_v18  ;;  %v2270_v23 = vld [vmem:[#allocation10_spill] sm:$0xff]  ;;  %1464 = vmatprep.subr.mxu1 %v1258_v47 }
 0x23b   :  { %939 = vmatprep.subr.mxu0 %v791_v61  ;;  %v719_v44 = vpop.permute.xlu1 %718  ;;  %1465 = vmatpush3.msra.mxu1 %v1242_v20 }
 0x23c   :  { %v724_v6 = vsel %vm150_vm5, %v719_v44, %v2052_v12  ;;  %940 = vmatpush1.msra.mxu0 %v790_v1  ;;  %v731_v63 = vsel %vm150_vm5, %v2038_v35, %v719_v44  ;;  %v2269_v35 = vld [vmem:[#allocation11_spill] sm:$0xff]  ;;  %v707_v12 = vmul.f32 %v706_v25, %v2270_v23  ;;  %1466 = vmatprep.subr.mxu1 %v1257_v31 }
 0x23d   :  { %941 = vmatprep.subr.mxu0 %v766_v30  ;;  %v733_v5 = vmul.f32 %v724_v6, %v1860_v37  ;;  %v732_v46 = vmul.f32 %v731_v63, %v2268_v28  ;;  %v708_v8 = vmul.f32 %v699_v62, %v2269_v35  ;;  %v2272_v37 = vld [vmem:[#allocation12_spill] sm:$0xff]  ;;  %1467 = vmatpush3.msra.mxu1 %v1241_v45 }
 0x23e   :  { %942 = vmatpush1.msra.mxu0 %v765_v7  ;;  %1468 = vmatprep.subr.mxu1 %v1256_v50 }
 0x23f   :  { %v669_v34 = vpop.permute.xlu1 %668  ;;  %943 = vmatprep.subr.mxu0 %v758_v49  ;;  %1469 = vmatpush3.msra.mxu1 %v1240_v52 }
 0x240   :  { %v674_v59 = vsel %vm56_vm7, %v669_v34, %v671_v21  ;;  %944 = vmatpush1.msra.mxu0 %v757_v48  ;;  %v681_v56 = vsel %vm56_vm7, %v2068_v39, %v669_v34  ;;  %v1255_v39 = vld [vmem:[%s2249_s7 + $0xd8] sm:$0xff]  ;;  %v1236_v21 = vld [vmem:[%s2249_s7 + $0x40] sm:$0xff] }
 0x241   :  { %945 = vmatprep.subr.mxu0 %v733_v5  ;;  %v683_v22 = vmul.f32 %v674_v59, %v2271_v36  ;;  %v682_v17 = vmul.f32 %v681_v56, %v2272_v37  ;;  %1470 = vmatprep.subr.mxu1 %v1255_v39 }
 0x242   :  { %946 = vmatpush1.msra.mxu0 %v732_v46  ;;  %1471 = vmatpush3.msra.mxu1 %v1239_v10 }
 0x243   :  { %947 = vmatprep.subr.mxu0 %v708_v8  ;;  %1472 = vmatprep.subr.mxu1 %v1254_v60  ;;  %v914_v43 = vpop.permute.xlu0 %913 }
 0x244   :  { %948 = vmatpush1.msra.mxu0 %v707_v12  ;;  %1473 = vmatpush3.msra.mxu1 %v1238_v24 }
 0x245   :  { %949 = vmatprep.subr.mxu0 %v683_v22  ;;  %1474 = vmatprep.subr.mxu1 %v1253_v15 }
 0x246   :  { %950 = vmatpush1.msra.mxu0 %v682_v17  ;;  %1475 = vmatpush3.msra.mxu1 %v1237_v38 }
 0x247   :  { %1423 = vmatmul.mubr.msk.f32.vlgmr.msra.gmra.mxu0 %vm495_vm8, %v2081_v26  ;;  %1096 = vmatprep.subr.mxu0 %v2273_v11  ;;  %v1250_v26 = vld [vmem:[%s2249_s7 + $0xb0] sm:$0xff] }
 0x248   :  { %1097 = vmatpush1.msra.mxu0 %v2274_v54  ;;  %1130 = vmatprep.mubr.f32.mxu0 %v2267_v33  ;;  %v1245_v33 = vld [vmem:[%s2249_s7 + $0x88] sm:$0xff] }
 0x249   :  { %1427 = vmatprep.subr.mxu0 %v1259_v40  ;;  %1476 = vmatprep.subr.mxu1 %v1252_v19  ;;  %v1232_v40 = vld [vmem:[%s2249_s7 + $0x20] sm:$0xff] }
 0x24a   :  { %1477 = vmatpush3.msra.mxu1 %v1236_v21 }
 0x24b   :  { %1425 = vmatmul.mubr.msk.f32.vlgmr.msra.gmra.mxu0 %vm1062_vm9, %v1061_v9  ;;  %1478 = vmatprep.subr.mxu1 %v1251_v55  ;;  %v1229_v9 = vld [vmem:[%s2249_s7 + $0x8] sm:$0xff]  ;;  %s1558_s7 = smov 64  }
 0x24c   :  { %1428 = vmatpush3.msra.mxu0 %v1243_v42  ;;  %1479 = vmatpush3.msra.mxu1 %v1235_v51 }
 0x24d   :  { %1429 = vmatprep.subr.mxu0 %v1258_v47  ;;  %1480 = vmatprep.subr.mxu1 %v1250_v26 }
 0x24e   :  { %1430 = vmatpush3.msra.mxu0 %v1242_v20  ;;  %1481 = vmatpush3.msra.mxu1 %v1234_v27 }
 0x24f   :  { %1431 = vmatprep.subr.mxu0 %v1257_v31  ;;  %1482 = vmatprep.subr.mxu1 %v1249_v13 }
 0x250   :  { %1432 = vmatpush3.msra.mxu0 %v1241_v45  ;;  %1483 = vmatpush3.msra.mxu1 %v1233_v41 }
 0x251   :  { %1433 = vmatprep.subr.mxu0 %v1256_v50  ;;  %1484 = vmatprep.subr.mxu1 %v1248_v14 }
 0x252   :  { %1434 = vmatpush3.msra.mxu0 %v1240_v52  ;;  %1485 = vmatpush3.msra.mxu1 %v1232_v40 }
 0x253   :  { %1435 = vmatprep.subr.mxu0 %v1255_v39  ;;  %1486 = vmatprep.subr.mxu1 %v1247_v16 }
 0x254   :  { %1436 = vmatpush3.msra.mxu0 %v1239_v10  ;;  %1487 = vmatpush3.msra.mxu1 %v1231_v3 }
 0x255   :  { %1437 = vmatprep.subr.mxu0 %v1254_v60  ;;  %1488 = vmatprep.subr.mxu1 %v1246_v4 }
 0x256   :  { %1438 = vmatpush3.msra.mxu0 %v1238_v24  ;;  %1489 = vmatpush3.msra.mxu1 %v1230_v29 }
 0x257   :  { %1439 = vmatprep.subr.mxu0 %v1253_v15  ;;  %1490 = vmatprep.subr.mxu1 %v1245_v33 }
 0x258   :  { %1440 = vmatpush3.msra.mxu0 %v1237_v38  ;;  %1491 = vmatpush3.msra.mxu1 %v1229_v9 }
 0x259   :  { %1441 = vmatprep.subr.mxu0 %v1252_v19  ;;  %1492 = vmatprep.subr.mxu1 %v1244_v57 }
 0x25a   :  { %1442 = vmatpush3.msra.mxu0 %v1236_v21  ;;  %1493 = vmatpush3.msra.mxu1 %v1228_v32 }
 0x25b   :  { %1443 = vmatprep.subr.mxu0 %v1251_v55 }
 0x25c   :  { %1444 = vmatpush3.msra.mxu0 %v1235_v51 }
 0x25d   :  { %1445 = vmatprep.subr.mxu0 %v1250_v26 }
 0x25e   :  { %1446 = vmatpush3.msra.mxu0 %v1234_v27 }
 0x25f   :  { %1447 = vmatprep.subr.mxu0 %v1249_v13 }
 0x260   :  { %1448 = vmatpush3.msra.mxu0 %v1233_v41 }
 0x261   :  { %1449 = vmatprep.subr.mxu0 %v1248_v14 }
 0x262   :  { %1450 = vmatpush3.msra.mxu0 %v1232_v40 }
 0x263   :  { %1451 = vmatprep.subr.mxu0 %v1247_v16 }
 0x264   :  { %1452 = vmatpush3.msra.mxu0 %v1231_v3 }
 0x265   :  { %1453 = vmatprep.subr.mxu0 %v1246_v4 }
 0x266   :  { %1454 = vmatpush3.msra.mxu0 %v1230_v29 }
 0x267   :  { %1455 = vmatprep.subr.mxu0 %v1245_v33 }
 0x268   :  { %1456 = vmatpush3.msra.mxu0 %v1229_v9 }
 0x269   :  { %1457 = vmatprep.subr.mxu0 %v1244_v57 }
 0x26a   :  { %1458 = vmatpush3.msra.mxu0 %v1228_v32 }
 0x2f4   :  { %v1056_v42 = vpop.f32.mrf.mxu1 }
 0x2f5   :  { %v1057_v0 = vadd.f32 %v1056_v42, %v914_v43 }
 0x2f6   :  { %v1058_v2 = vpop.f32.mrf.mxu1 }
 0x2f7   :  { %v1059_v61 = vadd.f32 %v1058_v2, %v914_v43 }
 0x2f8   :  { %v1203_v1 = vpop.f32.mrf.mxu1 }
 0x2f9   :  { %v1204_v53 = vadd.f32 %v1203_v1, %v1057_v0 }
 0x2fa   :  { %v1205_v58 = vpop.f32.mrf.mxu1 }
 0x2fb   :  { %v1214_v18 = vmul.f32 0.70710677, %v1204_v53  ;;  %v1206_v44 = vadd.f32 %v1205_v58, %v1059_v61  ;;  %v1210_v56 = vmul.f32 0.5, %v1204_v53 }
 0x2fd   :  { %1518 = verf.f32 %v1214_v18  ;;  %v1215_v30 = vmul.f32 0.70710677, %v1206_v44  ;;  %v1211_v35 = vmul.f32 0.5, %v1206_v44 }
 0x2ff   :  { %1520 = verf.f32 %v1215_v30 }
 0x307   :  { %v985_v6 = vpop.f32.mrf.mxu0 }
 0x308   :  { %v986_v49 = vadd.f32 %v985_v6, %v914_v43 }
 0x309   :  { %v987_v7 = vpop.f32.mrf.mxu0 }
 0x30a   :  { %v1519_v63 = vpop.eup %1518  ;;  %v988_v62 = vadd.f32 %v987_v7, %v914_v43 }
 0x30b   :  { %v1132_v48 = vpop.f32.mrf.mxu0  ;;  %v1222_v28 = vadd.f32 1.0, %v1519_v63 }
 0x30c   :  { %v1133_v25 = vadd.f32 %v1132_v48, %v986_v49  ;;  %v1521_v5 = vpop.eup %1520 }
 0x30d   :  { %v1134_v34 = vpop.f32.mrf.mxu0  ;;  %v1223_v8 = vadd.f32 1.0, %v1521_v5  ;;  %v1226_v36 = vmul.f32 %v1222_v28, %v1210_v56 }
 0x30e   :  { %v1212_v46 = vmul.f32 0.70710677, %v1133_v25  ;;  %v1135_v59 = vadd.f32 %v1134_v34, %v988_v62  ;;  %v1208_v47 = vmul.f32 0.5, %v1133_v25 }
 0x30f   :  { %v1227_v12 = vmul.f32 %v1223_v8, %v1211_v35 }
 0x310   :  { %1522 = verf.f32 %v1212_v46  ;;  %v1213_v23 = vmul.f32 0.70710677, %v1135_v59  ;;  %v1209_v11 = vmul.f32 0.5, %v1135_v59 }
 0x311   :  { %1394 = vmatprep.mubr.f32.mxu1 %v1227_v12 }
 0x312   :  { %1524 = verf.f32 %v1213_v23  ;;  %1395 = vmatmul.mubr.f32.vlgmr.msra.gmra.mxu1 %v1226_v36 }
 0x31d   :  { %v1523_v22 = vpop.eup %1522 }
 0x31e   :  { %v1220_v17 = vadd.f32 1.0, %v1523_v22 }
 0x31f   :  { %v1525_v37 = vpop.eup %1524 }
 0x320   :  { %v1221_v54 = vadd.f32 1.0, %v1525_v37  ;;  %v1224_v31 = vmul.f32 %v1220_v17, %v1208_v47 }
 0x322   :  { %v1225_v20 = vmul.f32 %v1221_v54, %v1209_v11 }
 0x324   :  { %1324 = vmatprep.mubr.f32.mxu0 %v1225_v20 }
 0x325   :  { %1325 = vmatmul.mubr.f32.vlgmr.msra.gmra.mxu0 %v1224_v31 }
 0x3d2   :  { %v1494_v45 = vpop.f32.mrf.mxu1 }
 0x3d4   :  { %v1495_v50 = vpop.f32.mrf.mxu1 }
 0x3d5   :  { %v1496_v52 = vadd.f32 %v1495_v50, %v1494_v45 }
 0x3d7   :  { %1401 = vrot.lane.b32.xlu1 %v1496_v52, %s1558_s7 }
 0x3e5   :  { %v1459_v39 = vpop.f32.mrf.mxu0 }
 0x3e7   :  { %v1460_v10 = vpop.f32.mrf.mxu0 }
 0x3e8   :  { %v1461_v60 = vadd.f32 %v1460_v10, %v1459_v39 }
 0x449   :  { %v1402_v24 = vpop.permute.xlu1 %1401 }
 0x44a   :  { %v1405_v15 = vsel %vm1404_vm10, %v1461_v60, %v1402_v24 }
 0x44b   :  { %1406 = vst [vmem:[#allocation4] sm:$0xff] %v1405_v15 }
 0x44c   :  { %1537 = shalt.err (!%p1534_p4)
}
 0x44d   :  { %1416 = dma.vmem_to_hbm [thread:$0]  %s1414_s3, 128, %s2250_s8, [#allocation5]  }
 0x44e   :  { %1546 = dma.done.wait [#allocation5], 128  }
 0x44f   :  { %1547 = vsyncadd [#allocation5], 4294967168 }
 0x450   :  { %1420 = vsyncpa [#allocation5], 1 }

</bundles_post_ra>
